<compile_context>
chip_gen: v7x
topology: tpu7x:2x2x1
jax: 0.10.0
libtpu: 0.0.40
codegen_flags: <defaults>
</compile_context>

<pallas_src>
import functools

import jax
import jax.numpy as jnp
from jax.experimental import pallas as pl
from jax.experimental.pallas import tpu as pltpu


def _round_up(x: int, m: int) -> int:
    return ((x + m - 1) // m) * m


def _patch_embed_kernel(p_ref, w_ref, params_ref, o_ref, *, eps: float):
    # p_ref:      (TM, K)  activation dtype (f32 or bf16)
    # w_ref:      (K, E)   same dtype as patches (MXU-native when bf16)
    # params_ref: (3, E)   f32  rows = [conv_bias, ln_gamma, ln_beta]
    # o_ref:      (TM, E)  activation dtype
    params = params_ref[...]                      # (3, E) f32
    bias = params[0:1, :]
    gamma = params[1:2, :]
    beta = params[2:3, :]

    # Matmul in the storage dtype, accumulate in f32 on the MXU.
    y = jnp.dot(p_ref[...], w_ref[...], preferred_element_type=jnp.float32)
    y = y + bias

    # LayerNorm over the embedding (last, lane) axis. Biased variance, as in PyTorch.
    mean = jnp.mean(y, axis=-1, keepdims=True)
    yc = y - mean
    var = jnp.mean(yc * yc, axis=-1, keepdims=True)
    inv = jax.lax.rsqrt(var + eps)                # EUP slot
    o_ref[...] = (yc * inv * gamma + beta).astype(o_ref.dtype)


def overlap_patch_embed(x, weight, bias, gamma, beta, *, eps: float = 1e-5,
                        tm_max: int = 1024, out_dtype=None):
    """Pallas implementation of OverlapPatchEmbed.forward.

    x      : (B, Cin, H, W, D)
    weight : (E, Cin, 2, 2, 2)   Conv3d weight (kernel=2, stride=2, padding=1)
    bias   : (E,)                Conv3d bias
    gamma  : (E,)                LayerNorm weight
    beta   : (E,)                LayerNorm bias
    returns (out, Ho, Wo, Do) with out of shape (B, N, E), N = Ho*Wo*Do
    """
    B, Cin, H, W, D = x.shape
    E = weight.shape[0]
    k, s, p = 2, 2, 1
    Ho = (H + 2 * p - k) // s + 1
    Wo = (W + 2 * p - k) // s + 1
    Do = (D + 2 * p - k) // s + 1
    N = Ho * Wo * Do
    M = B * N
    K = Cin * k * k * k
    out_dtype = x.dtype if out_dtype is None else out_dtype

    # --- im2col (layout plumbing in XLA; channels-last so the transpose moves
    #     contiguous 2*Cin runs instead of size-2 chunks) -------------------------
    x_cl = jnp.transpose(x, (0, 2, 3, 4, 1))                      # (B, H, W, D, Cin)
    x_cl = jnp.pad(x_cl, ((0, 0),
                          (p, 2 * Ho - H - p),
                          (p, 2 * Wo - W - p),
                          (p, 2 * Do - D - p),
                          (0, 0)))                                # spatial dims -> 2*out
    xp = x_cl.reshape(B, Ho, 2, Wo, 2, Do, 2, Cin)
    # -> (B, Ho, Wo, Do, kh, kw, kd, Cin); K-order = (kh, kw, kd, Cin)
    patches = xp.transpose(0, 1, 3, 5, 2, 4, 6, 7).reshape(M, K)

    # Conv weight permuted to match the patch K-order; same dtype as patches so the
    # MXU runs bf16-native when activations are bf16.
    w_mat = jnp.transpose(weight, (2, 3, 4, 1, 0)).reshape(K, E).astype(patches.dtype)
    # Merge conv bias + LN gamma + LN beta into one (3, E) f32 operand (single DMA).
    params = jnp.stack([bias, gamma, beta]).astype(jnp.float32)

    # --- row tiling: balance across >= 2 blocks (v7x megacore), multiple of 8 ----
    n_blocks = max(2, pl.cdiv(M, tm_max)) if M > 8 else 1
    tm = min(_round_up(pl.cdiv(M, n_blocks), 8), _round_up(M, 8))
    grid = (pl.cdiv(M, tm),)   # ragged last block handled by Pallas (no pad / slice)

    out_flat = pl.pallas_call(
        functools.partial(_patch_embed_kernel, eps=eps),
        out_shape=jax.ShapeDtypeStruct((M, E), out_dtype),
        grid_spec=pltpu.PrefetchScalarGridSpec(
            num_scalar_prefetch=0,
            grid=grid,
            in_specs=[
                pl.BlockSpec((tm, K), lambda i: (i, 0)),   # patches (row tile)
                pl.BlockSpec((K, E), lambda i: (0, 0)),    # conv weight (resident)
                pl.BlockSpec((3, E), lambda i: (0, 0)),    # [bias; gamma; beta]
            ],
            out_specs=pl.BlockSpec((tm, E), lambda i: (i, 0)),   # lane-dense E=128
        ),
        compiler_params=pltpu.CompilerParams(
            dimension_semantics=("parallel",),
        ),
    )(patches, w_mat, params)

    out = out_flat.reshape(B, N, E)   # free reshape, no copy
    return out, Ho, Wo, Do


# --------------------------- pure-JAX reference ------------------------------------
def _reference(x, weight, bias, gamma, beta, eps=1e-5):
    y = jax.lax.conv_general_dilated(
        x.astype(jnp.float32), weight.astype(jnp.float32),
        window_strides=(2, 2, 2),
        padding=((1, 1), (1, 1), (1, 1)),
        dimension_numbers=("NCDHW", "OIDHW", "NCDHW"),
    )
    y = y + bias.astype(jnp.float32).reshape(1, -1, 1, 1, 1)
    B, E = y.shape[0], y.shape[1]
    Ho, Wo, Do = y.shape[2], y.shape[3], y.shape[4]
    y = y.reshape(B, E, -1).transpose(0, 2, 1)          # (B, N, E)
    mean = jnp.mean(y, axis=-1, keepdims=True)
    var = jnp.mean((y - mean) ** 2, axis=-1, keepdims=True)
    out = (y - mean) * jax.lax.rsqrt(var + eps) * gamma + beta
    return out.astype(x.dtype), Ho, Wo, Do


if __name__ == "__main__":
    key = jax.random.PRNGKey(0)
    kx, kw, kb, kg, kbe = jax.random.split(key, 5)

    # Small shapes consistent with the module: batch=2, in_chans=3, 16^3 volume,
    # embed_dim=128 (module defaults).
    B, Cin, H, W, D = 2, 3, 16, 16, 16
    E = 128

    x = jax.random.normal(kx, (B, Cin, H, W, D), dtype=jnp.float32)
    weight = 0.1 * jax.random.normal(kw, (E, Cin, 2, 2, 2), dtype=jnp.float32)
    bias = 0.1 * jax.random.normal(kb, (E,), dtype=jnp.float32)
    gamma = 1.0 + 0.1 * jax.random.normal(kg, (E,), dtype=jnp.float32)
    beta = 0.1 * jax.random.normal(kbe, (E,), dtype=jnp.float32)

    ref, Ho_r, Wo_r, Do_r = _reference(x, weight, bias, gamma, beta)

    # f32 path (tight check against the conv + LayerNorm reference).
    out, Ho, Wo, Do = overlap_patch_embed(x, weight, bias, gamma, beta)
    out = jax.block_until_ready(out)
    assert (Ho, Wo, Do) == (Ho_r, Wo_r, Do_r) == (9, 9, 9)
    assert out.shape == (B, Ho * Wo * Do, E)
    assert out.dtype == x.dtype
    assert jnp.allclose(out, ref, atol=1e-4, rtol=1e-4), "f32 mismatch vs reference"

    # bf16 activation path (the HBM-bound configuration the kernel is tuned for:
    # bf16 patches in, bf16 MXU operands, bf16 writeback, f32 accumulation / LN).
    out_bf16, _, _, _ = overlap_patch_embed(x.astype(jnp.bfloat16), weight, bias, gamma, beta)
    out_bf16 = jax.block_until_ready(out_bf16)
    assert out_bf16.dtype == jnp.bfloat16
    err = jnp.max(jnp.abs(out_bf16.astype(jnp.float32) - ref.astype(jnp.float32)))
    assert float(err) < 0.2, f"bf16 path mismatch vs reference: {float(err)}"

    print("KERNEL_OK")
</pallas_src>

<mosaic_0001>
module attributes {stable_mosaic.version = 11 : i64} {
  func.func @_patch_embed_kernel(%arg0: i32, %arg1: memref<736x24xf32, #tpu.memory_space<vmem>>, %arg2: memref<24x128xf32, #tpu.memory_space<vmem>>, %arg3: memref<3x128xf32, #tpu.memory_space<vmem>>, %arg4: memref<736x128xf32, #tpu.memory_space<vmem>>) attributes {dimension_semantics = [#tpu.dimension_semantics<parallel>], iteration_bounds = array<i64: 2>, scalar_prefetch = 0 : i64, scratch_operands = 0 : i64, tpu.core_type = #tpu.core_type<tc>, window_params = [{transform_indices = @transform_0, window_bounds = array<i64: 736, 24>}, {pipeline_mode = #tpu.pipeline_mode<synchronous>, transform_indices = @transform_1, window_bounds = array<i64: 24, 128>}, {pipeline_mode = #tpu.pipeline_mode<synchronous>, transform_indices = @transform_2, window_bounds = array<i64: 3, 128>}, {transform_indices = @transform_3, window_bounds = array<i64: 736, 128>}]} {
    %c0 = arith.constant 0 : index
    %c0_0 = arith.constant 0 : index
    %0 = vector.load %arg3[%c0, %c0_0] : memref<3x128xf32, #tpu.memory_space<vmem>>, vector<3x128xf32>
    %1 = vector.extract_strided_slice %0 {offsets = [0, 0], sizes = [1, 128], strides = [1, 1]} : vector<3x128xf32> to vector<1x128xf32>
    %2 = vector.extract_strided_slice %0 {offsets = [1, 0], sizes = [1, 128], strides = [1, 1]} : vector<3x128xf32> to vector<1x128xf32>
    %3 = vector.extract_strided_slice %0 {offsets = [2, 0], sizes = [1, 128], strides = [1, 1]} : vector<3x128xf32> to vector<1x128xf32>
    %c0_1 = arith.constant 0 : index
    %c0_2 = arith.constant 0 : index
    %4 = vector.load %arg1[%c0_1, %c0_2] : memref<736x24xf32, #tpu.memory_space<vmem>>, vector<736x24xf32>
    %c0_3 = arith.constant 0 : index
    %c0_4 = arith.constant 0 : index
    %5 = vector.load %arg2[%c0_3, %c0_4] : memref<24x128xf32, #tpu.memory_space<vmem>>, vector<24x128xf32>
    %cst = arith.constant dense<0.000000e+00> : vector<736x128xf32>
    %6 = tpu.matmul %4, %5, %cst {dimension_numbers = #tpu.dot_dimension_numbers<[1], [0], [0], [1], [0, 0, 1, 1], [], []>} : vector<736x24xf32>, vector<24x128xf32>, vector<736x128xf32> -> vector<736x128xf32>
    %7 = vector.broadcast %1 : vector<1x128xf32> to vector<736x128xf32>
    %8 = arith.addf %6, %7 : vector<736x128xf32>
    %cst_5 = arith.constant dense<0.000000e+00> : vector<736xf32>
    %9 = vector.multi_reduction <add>, %8, %cst_5 [1] : vector<736x128xf32> to vector<736xf32>
    %10 = vector.shape_cast %9 : vector<736xf32> to vector<736x1xf32>
    %cst_6 = arith.constant 1.280000e+02 : f32
    %11 = vector.broadcast %cst_6 : f32 to vector<736x1xf32>
    %12 = arith.divf %10, %11 : vector<736x1xf32>
    %13 = vector.broadcast %12 : vector<736x1xf32> to vector<736x128xf32>
    %14 = arith.subf %8, %13 : vector<736x128xf32>
    %15 = arith.mulf %14, %14 : vector<736x128xf32>
    %cst_7 = arith.constant dense<0.000000e+00> : vector<736xf32>
    %16 = vector.multi_reduction <add>, %15, %cst_7 [1] : vector<736x128xf32> to vector<736xf32>
    %17 = vector.shape_cast %16 : vector<736xf32> to vector<736x1xf32>
    %cst_8 = arith.constant 1.280000e+02 : f32
    %18 = vector.broadcast %cst_8 : f32 to vector<736x1xf32>
    %19 = arith.divf %17, %18 : vector<736x1xf32>
    %cst_9 = arith.constant 9.99999974E-6 : f32
    %20 = vector.broadcast %cst_9 : f32 to vector<736x1xf32>
    %21 = arith.addf %19, %20 : vector<736x1xf32>
    %22 = math.rsqrt %21 : vector<736x1xf32>
    %23 = vector.broadcast %22 : vector<736x1xf32> to vector<736x128xf32>
    %24 = arith.mulf %14, %23 : vector<736x128xf32>
    %25 = vector.broadcast %2 : vector<1x128xf32> to vector<736x128xf32>
    %26 = arith.mulf %24, %25 : vector<736x128xf32>
    %27 = vector.broadcast %3 : vector<1x128xf32> to vector<736x128xf32>
    %28 = arith.addf %26, %27 : vector<736x128xf32>
    %c0_10 = arith.constant 0 : index
    %c0_11 = arith.constant 0 : index
    %29 = vector.load %arg4[%c0_10, %c0_11] : memref<736x128xf32, #tpu.memory_space<vmem>>, vector<736x128xf32>
    tpu.vector_store %arg4[%c0_10, %c0_11], %28 {strides = array<i32>} : memref<736x128xf32, #tpu.memory_space<vmem>>, vector<736x128xf32>,
    return
  }
  func.func @transform_0(%arg0: i32) -> (i32, i32) {
    %c0_i32 = arith.constant 0 : i32
    %c0_i32_0 = arith.constant 0 : i32
    return %arg0, %c0_i32 : i32, i32
  }
  func.func @transform_1(%arg0: i32) -> (i32, i32) {
    %c0_i32 = arith.constant 0 : i32
    %c0_i32_0 = arith.constant 0 : i32
    %c0_i32_1 = arith.constant 0 : i32
    return %c0_i32, %c0_i32_0 : i32, i32
  }
  func.func @transform_2(%arg0: i32) -> (i32, i32) {
    %c0_i32 = arith.constant 0 : i32
    %c0_i32_0 = arith.constant 0 : i32
    %c0_i32_1 = arith.constant 0 : i32
    return %c0_i32, %c0_i32_0 : i32, i32
  }
  func.func @transform_3(%arg0: i32) -> (i32, i32) {
    %c0_i32 = arith.constant 0 : i32
    %c0_i32_0 = arith.constant 0 : i32
    return %arg0, %c0_i32 : i32, i32
  }
}

</mosaic_0001>

<bundles_post_ra>
// kernel: tpu_custom_call.1
= control target key start
LH: loop header
LB: loop body
LE: loop exit
PB: predicated region body
PF: predicated region fallthrough
CT: control target
= control target key end

     0   :  { %8 = vsyncpa [#allocation3], 0  ;;  %s5100_s0 = inlined_call_operand.vmem [shape: f32[1458,24], index: 0, kind: input, shape index: {}]   ;;  %s5101_s1 = inlined_call_operand.vmem [shape: f32[24,128], index: 1, kind: input, shape index: {}]   ;;  %s5102_s2 = inlined_call_operand.vmem [shape: f32[3,128], index: 2, kind: input, shape index: {}]   ;;  %s5103_s3 = inlined_call_operand.hbm [shape: f32[1458,128], index: 3, kind: output, shape index: {}]  }
   0x1   :  { %10 = vsyncpa [#allocation3 + $0x1], 0  ;;  %s3142_s12 = smov 0   ;;  %s3144_s13 = smov 0  }
   0x2   :  { %s3146_s14 = smov 0   ;;  %s3148_s15 = smov 0  }
   0x3 LB: > { %s3163_s16 = sadd.s32 4294967295, %s3117_s15   ;;  %s2477_s17 = sadd.s32 4294967294, %s3117_s15   ;;  %s3117_s15 = sphi %s3148_s15, %s5440_s15   ;;  %s3113_s14 = sphi %s3146_s14, %s5439_s14   ;;  %s3109_s13 = sphi %s3144_s13, %s5438_s13   ;;  %s3105_s12 = sphi %s3142_s12, %s5437_s12  }
   0x4   : > { %s3167_s18 = sadd.s32 1, %s3117_s15   ;;  %s91_s19 = sadd.s32 1, %s3113_s14 }
   0x5   : > { %s88_s20 = ssub.s32 %s3117_s15, %s3167_s18  ;;  %p101_p0 = scmp.ne.s32.totalorder %s3113_s14, %s3109_s13 }
   0x6   : > { %p89_p1 = scmp.eq.s32.totalorder %s88_s20, 0  ;;  %p102_p2 = scmp.eq.s32.totalorder %s3163_s16, 1 }
   0x7   : > { %p107_p3 = scmp.ne.s32.totalorder %s3109_s13, %s3105_s12  ;;  %p108_p4 = scmp.eq.s32.totalorder %s2477_s17, 1 }
   0x8   : > { %s3178_s21 = scalar_select %p89_p1, %s3113_s14, %s91_s19  }
   0x9   : > { %p3180_p5 = por %p102_p2, %p101_p0  ;;  %p3184_p6 = por %p108_p4, %p107_p3 }
   0xa   : > { %p2480_p7 = scmp.ge.s32.totalorder %s3117_s15, 1  ;;  %p149_p8 = scmp.lt.s32.totalorder %s3117_s15, 3 }
   0xc   : > { %p150_p9 = pnand %p2480_p7, %p149_p8 }
   0xe   : > { %153 = sbr.rel (%p150_p9) target bundleno = 802 (0x322), region = 32 }
  0x15   : > { %v289_v0 = vld [vmem:[%s5101_s1] sm:$0xff]  ;;  %v290_v1 = vld [vmem:[%s5101_s1 + $0x8] sm:$0xff]  ;;  %s3197_s28 = smul.u32 92, %s3163_s16  ;;  %v291_v3 = vld [vmem:[%s5101_s1 + $0x10] sm:$0xff]  ;;  %vm296_vm0 = vcmask 195584   ;;  %s174_s11 = sand.u32 1, %s3109_s13  }
  0x16   : > { %v2821_v2 = vpack.c.bf16 %v290_v1, %v289_v0  ;;  %s4616_s20 = smul.u32 736, %s174_s11  ;;  %s5039_s25 = scalar_lea.sflag [#allocation3], %s174_s11 }
  0x17   : > { %p182_p10 = scmp.lt.s32.totalorder %s3197_s28, 182  ;;  %s2404_s26 = ssub.s32 (%p3180_p5), 183, %s3197_s28 }
  0x18   : > { %2822 = vmatprep.subr.bf16.mxu0 %v2821_v2  ;;  %2825 = vmatprep.subr.bf16.mxu1 %v2821_v2  ;;  %s4648_s24 = scalar_lea.vmem [#allocation2], %s4616_s20  ;;  %p2405_p11 = scmp.lt.s32.totalorder (%p3180_p5), %s2404_s26, 92 }
  0x19   : > { %2824 = vmatpush3.bf16.msra.mxu0 %v2821_v2  ;;  %2827 = vmatpush3.bf16.msra.mxu1 %v2821_v2  ;;  %s183_s4 = scalar_select %p182_p10, %s3197_s28, 182 }
  0x1a   : > { %2681 = vmatprep.subr.mxu0 %v291_v3  ;;  %2826 = vmatprep.subr.mxu1 %v291_v3 }
  0x1b   : > { %s2481_s5 = sshll.u32 %s183_s4, 3 }
  0x1c   : > { %s3207_s8 = scalar_lea.vmem %s5100_s0, %s2481_s5 }
  0x1d   : > { %2682 = vmatpush3.msra.mxu0 %v291_v3  ;;  %2828 = vmatpush3.msra.mxu1 %v291_v3  ;;  %v197_v4 = vld [vmem:[%s3207_s8] sm:$0xff]  ;;  %v243_v5 = vld [vmem:[%s3207_s8 + $0x170] sm:$0xff]  ;;  %v198_v6 = vld [vmem:[%s3207_s8 + $0x8] sm:$0xff] }
  0x1e   : > { %2683 = vmatprep.mubr.msk.f32.mxu0 %vm296_vm0, %v197_v4  ;;  %2752 = vmatprep.mubr.msk.f32.mxu1 %vm296_vm0, %v243_v5  ;;  %v244_v7 = vld [vmem:[%s3207_s8 + $0x178] sm:$0xff]  ;;  %v199_v8 = vld [vmem:[%s3207_s8 + $0x10] sm:$0xff]  ;;  %v245_v9 = vld [vmem:[%s3207_s8 + $0x180] sm:$0xff] }
  0x1f   : > { %2684 = vmatmul.mubr.msk.f32.vlgmr.msra.gmra.mrb[0].mxu0 %vm296_vm0, %v198_v6  ;;  %2753 = vmatmul.mubr.msk.f32.vlgmr.msra.gmra.mrb[0].mxu1 %vm296_vm0, %v244_v7  ;;  %v200_v10 = vld [vmem:[%s3207_s8 + $0x18] sm:$0xff]  ;;  %v246_v11 = vld [vmem:[%s3207_s8 + $0x188] sm:$0xff]  ;;  %v201_v12 = vld [vmem:[%s3207_s8 + $0x20] sm:$0xff] }
  0x20   : > { %2686 = vmatprep.mubr.msk.f32.mxu0 %vm296_vm0, %v199_v8  ;;  %2755 = vmatprep.mubr.msk.f32.mxu1 %vm296_vm0, %v245_v9  ;;  %v247_v13 = vld [vmem:[%s3207_s8 + $0x190] sm:$0xff]  ;;  %v202_v14 = vld [vmem:[%s3207_s8 + $0x28] sm:$0xff]  ;;  %v248_v15 = vld [vmem:[%s3207_s8 + $0x198] sm:$0xff] }
  0x21   : > { %v203_v16 = vld [vmem:[%s3207_s8 + $0x30] sm:$0xff]  ;;  %v249_v17 = vld [vmem:[%s3207_s8 + $0x1a0] sm:$0xff]  ;;  %v204_v18 = vld [vmem:[%s3207_s8 + $0x38] sm:$0xff] }
  0x22   : > { %v250_v19 = vld [vmem:[%s3207_s8 + $0x1a8] sm:$0xff]  ;;  %v205_v20 = vld [vmem:[%s3207_s8 + $0x40] sm:$0xff]  ;;  %v251_v21 = vld [vmem:[%s3207_s8 + $0x1b0] sm:$0xff] }
  0x23   : > { %2687 = vmatmul.mubr.msk.f32.gmra.mrb[2].mxu0 %vm296_vm0, %v200_v10  ;;  %2756 = vmatmul.mubr.msk.f32.gmra.mrb[2].mxu1 %vm296_vm0, %v246_v11  ;;  %v206_v22 = vld [vmem:[%s3207_s8 + $0x48] sm:$0xff]  ;;  %v252_v23 = vld [vmem:[%s3207_s8 + $0x1b8] sm:$0xff]  ;;  %v207_v24 = vld [vmem:[%s3207_s8 + $0x50] sm:$0xff] }
  0x24   : > { %2689 = vmatprep.mubr.msk.f32.mxu0 %vm296_vm0, %v201_v12  ;;  %2758 = vmatprep.mubr.msk.f32.mxu1 %vm296_vm0, %v247_v13  ;;  %v253_v25 = vld [vmem:[%s3207_s8 + $0x1c0] sm:$0xff]  ;;  %v208_v26 = vld [vmem:[%s3207_s8 + $0x58] sm:$0xff]  ;;  %v254_v27 = vld [vmem:[%s3207_s8 + $0x1c8] sm:$0xff] }
  0x25   : > { %v209_v28 = vld [vmem:[%s3207_s8 + $0x60] sm:$0xff]  ;;  %v255_v29 = vld [vmem:[%s3207_s8 + $0x1d0] sm:$0xff]  ;;  %v210_v30 = vld [vmem:[%s3207_s8 + $0x68] sm:$0xff] }
  0x26   : > { %v256_v31 = vld [vmem:[%s3207_s8 + $0x1d8] sm:$0xff]  ;;  %v211_v32 = vld [vmem:[%s3207_s8 + $0x70] sm:$0xff]  ;;  %v257_v33 = vld [vmem:[%s3207_s8 + $0x1e0] sm:$0xff] }
  0x27   : > { %2690 = vmatmul.mubr.msk.f32.gmra.mrb[4].mxu0 %vm296_vm0, %v202_v14  ;;  %2759 = vmatmul.mubr.msk.f32.gmra.mrb[4].mxu1 %vm296_vm0, %v248_v15  ;;  %v212_v34 = vld [vmem:[%s3207_s8 + $0x78] sm:$0xff]  ;;  %v258_v35 = vld [vmem:[%s3207_s8 + $0x1e8] sm:$0xff]  ;;  %v213_v36 = vld [vmem:[%s3207_s8 + $0x80] sm:$0xff] }
  0x28   : > { %2692 = vmatprep.mubr.msk.f32.mxu0 %vm296_vm0, %v203_v16  ;;  %2761 = vmatprep.mubr.msk.f32.mxu1 %vm296_vm0, %v249_v17  ;;  %v259_v37 = vld [vmem:[%s3207_s8 + $0x1f0] sm:$0xff]  ;;  %v214_v38 = vld [vmem:[%s3207_s8 + $0x88] sm:$0xff]  ;;  %v260_v39 = vld [vmem:[%s3207_s8 + $0x1f8] sm:$0xff] }
  0x29   : > { %v215_v40 = vld [vmem:[%s3207_s8 + $0x90] sm:$0xff]  ;;  %v261_v41 = vld [vmem:[%s3207_s8 + $0x200] sm:$0xff]  ;;  %v216_v42 = vld [vmem:[%s3207_s8 + $0x98] sm:$0xff] }
  0x2a   : > { %v262_v43 = vld [vmem:[%s3207_s8 + $0x208] sm:$0xff]  ;;  %v217_v44 = vld [vmem:[%s3207_s8 + $0xa0] sm:$0xff]  ;;  %v263_v45 = vld [vmem:[%s3207_s8 + $0x210] sm:$0xff] }
  0x2b   : > { %2693 = vmatmul.mubr.msk.f32.gmra.mrb[6].mxu0 %vm296_vm0, %v204_v18  ;;  %2762 = vmatmul.mubr.msk.f32.gmra.mrb[6].mxu1 %vm296_vm0, %v250_v19  ;;  %v218_v46 = vld [vmem:[%s3207_s8 + $0xa8] sm:$0xff]  ;;  %v264_v47 = vld [vmem:[%s3207_s8 + $0x218] sm:$0xff]  ;;  %v219_v48 = vld [vmem:[%s3207_s8 + $0xb0] sm:$0xff] }
  0x2c   : > { %2695 = vmatprep.mubr.msk.f32.mxu0 %vm296_vm0, %v205_v20  ;;  %2764 = vmatprep.mubr.msk.f32.mxu1 %vm296_vm0, %v251_v21  ;;  %v265_v49 = vld [vmem:[%s3207_s8 + $0x220] sm:$0xff]  ;;  %v220_v50 = vld [vmem:[%s3207_s8 + $0xb8] sm:$0xff]  ;;  %v266_v51 = vld [vmem:[%s3207_s8 + $0x228] sm:$0xff] }
  0x2d   : > { %v221_v52 = vld [vmem:[%s3207_s8 + $0xc0] sm:$0xff]  ;;  %v267_v53 = vld [vmem:[%s3207_s8 + $0x230] sm:$0xff]  ;;  %v222_v54 = vld [vmem:[%s3207_s8 + $0xc8] sm:$0xff] }
  0x2e   : > { %v268_v55 = vld [vmem:[%s3207_s8 + $0x238] sm:$0xff]  ;;  %v223_v56 = vld [vmem:[%s3207_s8 + $0xd0] sm:$0xff]  ;;  %v269_v57 = vld [vmem:[%s3207_s8 + $0x240] sm:$0xff] }
  0x2f   : > { %2696 = vmatmul.mubr.msk.f32.gmra.mrb[8].mxu0 %vm296_vm0, %v206_v22  ;;  %2765 = vmatmul.mubr.msk.f32.gmra.mrb[8].mxu1 %vm296_vm0, %v252_v23  ;;  %v224_v58 = vld [vmem:[%s3207_s8 + $0xd8] sm:$0xff]  ;;  %v270_v59 = vld [vmem:[%s3207_s8 + $0x248] sm:$0xff]  ;;  %v225_v60 = vld [vmem:[%s3207_s8 + $0xe0] sm:$0xff] }
  0x30   : > { %2698 = vmatprep.mubr.msk.f32.mxu0 %vm296_vm0, %v207_v24  ;;  %2767 = vmatprep.mubr.msk.f32.mxu1 %vm296_vm0, %v253_v25  ;;  %v271_v61 = vld [vmem:[%s3207_s8 + $0x250] sm:$0xff]  ;;  %v226_v62 = vld [vmem:[%s3207_s8 + $0xe8] sm:$0xff]  ;;  %v272_v63 = vld [vmem:[%s3207_s8 + $0x258] sm:$0xff] }
  0x31   : > { %v227_v0 = vld [vmem:[%s3207_s8 + $0xf0] sm:$0xff]  ;;  %v273_v1 = vld [vmem:[%s3207_s8 + $0x260] sm:$0xff]  ;;  %v228_v2 = vld [vmem:[%s3207_s8 + $0xf8] sm:$0xff] }
  0x32   : > { %v274_v3 = vld [vmem:[%s3207_s8 + $0x268] sm:$0xff]  ;;  %v229_v4 = vld [vmem:[%s3207_s8 + $0x100] sm:$0xff]  ;;  %v275_v5 = vld [vmem:[%s3207_s8 + $0x270] sm:$0xff] }
  0x33   : > { %2699 = vmatmul.mubr.msk.f32.gmra.mrb[10].mxu0 %vm296_vm0, %v208_v26  ;;  %2768 = vmatmul.mubr.msk.f32.gmra.mrb[10].mxu1 %vm296_vm0, %v254_v27  ;;  %v230_v6 = vld [vmem:[%s3207_s8 + $0x108] sm:$0xff]  ;;  %v276_v7 = vld [vmem:[%s3207_s8 + $0x278] sm:$0xff]  ;;  %v231_v8 = vld [vmem:[%s3207_s8 + $0x110] sm:$0xff] }
  0x34   : > { %2701 = vmatprep.mubr.msk.f32.mxu0 %vm296_vm0, %v209_v28  ;;  %2770 = vmatprep.mubr.msk.f32.mxu1 %vm296_vm0, %v255_v29  ;;  %v277_v9 = vld [vmem:[%s3207_s8 + $0x280] sm:$0xff]  ;;  %v232_v10 = vld [vmem:[%s3207_s8 + $0x118] sm:$0xff]  ;;  %v278_v11 = vld [vmem:[%s3207_s8 + $0x288] sm:$0xff] }
  0x35   : > { %v233_v12 = vld [vmem:[%s3207_s8 + $0x120] sm:$0xff]  ;;  %v279_v13 = vld [vmem:[%s3207_s8 + $0x290] sm:$0xff]  ;;  %v234_v14 = vld [vmem:[%s3207_s8 + $0x128] sm:$0xff] }
  0x36   : > { %v280_v15 = vld [vmem:[%s3207_s8 + $0x298] sm:$0xff]  ;;  %v235_v16 = vld [vmem:[%s3207_s8 + $0x130] sm:$0xff]  ;;  %v281_v17 = vld [vmem:[%s3207_s8 + $0x2a0] sm:$0xff] }
  0x37   : > { %2702 = vmatmul.mubr.msk.f32.gmra.mrb[12].mxu0 %vm296_vm0, %v210_v30  ;;  %2771 = vmatmul.mubr.msk.f32.gmra.mrb[12].mxu1 %vm296_vm0, %v256_v31  ;;  %v236_v18 = vld [vmem:[%s3207_s8 + $0x138] sm:$0xff]  ;;  %v282_v19 = vld [vmem:[%s3207_s8 + $0x2a8] sm:$0xff]  ;;  %v237_v20 = vld [vmem:[%s3207_s8 + $0x140] sm:$0xff] }
  0x38   : > { %2704 = vmatprep.mubr.msk.f32.mxu0 %vm296_vm0, %v211_v32  ;;  %2773 = vmatprep.mubr.msk.f32.mxu1 %vm296_vm0, %v257_v33  ;;  %v283_v21 = vld [vmem:[%s3207_s8 + $0x2b0] sm:$0xff]  ;;  %v238_v22 = vld [vmem:[%s3207_s8 + $0x148] sm:$0xff]  ;;  %v284_v23 = vld [vmem:[%s3207_s8 + $0x2b8] sm:$0xff]  ;;  %v292_v32 = vlaneseq }
  0x39   : > { %v239_v24 = vld [vmem:[%s3207_s8 + $0x150] sm:$0xff]  ;;  %v285_v25 = vld [vmem:[%s3207_s8 + $0x2c0] sm:$0xff]  ;;  %v240_v26 = vld [vmem:[%s3207_s8 + $0x158] sm:$0xff] }
  0x3a   : > { %v286_v27 = vld [vmem:[%s3207_s8 + $0x2c8] sm:$0xff]  ;;  %v241_v28 = vld [vmem:[%s3207_s8 + $0x160] sm:$0xff]  ;;  %v287_v29 = vld [vmem:[%s3207_s8 + $0x2d0] sm:$0xff]  ;;  %v3393_v33 = vshrl.u32 %v292_v32, 7 }
  0x3b   : > { %2705 = vmatmul.mubr.msk.f32.gmra.mrb[14].mxu0 %vm296_vm0, %v212_v34  ;;  %2774 = vmatmul.mubr.msk.f32.gmra.mrb[14].mxu1 %vm296_vm0, %v258_v35  ;;  %v242_v30 = vld [vmem:[%s3207_s8 + $0x168] sm:$0xff]  ;;  %v288_v31 = vld [vmem:[%s3207_s8 + $0x2d8] sm:$0xff]  ;;  %v196_v35 = vld [vmem:[%s5102_s2] sm:$0x7] }
  0x3c   : > { %2707 = vmatprep.mubr.msk.f32.mxu0 %vm296_vm0, %v213_v36  ;;  %2776 = vmatprep.mubr.msk.f32.mxu1 %vm296_vm0, %v259_v37  ;;  %5217 = vst [vmem:[#allocation5_spill] sm:$0xff] %v3393_v33  ;;  %v294_v34 = vsub.s32 0, %v3393_v33 }
  0x3e   : > { %v3399_v36 = vrot.slane %v196_v35, %v294_v34 }
  0x3f   : > { %2708 = vmatmul.mubr.msk.f32.gmra.mrb[16].mxu0 %vm296_vm0, %v214_v38  ;;  %2777 = vmatmul.mubr.msk.f32.gmra.mrb[16].mxu1 %vm296_vm0, %v260_v39 }
  0x40   : > { %2710 = vmatprep.mubr.msk.f32.mxu0 %vm296_vm0, %v215_v40  ;;  %2779 = vmatprep.mubr.msk.f32.mxu1 %vm296_vm0, %v261_v41 }
  0x43   : > { %2711 = vmatmul.mubr.msk.f32.gmra.mrb[18].mxu0 %vm296_vm0, %v216_v42  ;;  %2780 = vmatmul.mubr.msk.f32.gmra.mrb[18].mxu1 %vm296_vm0, %v262_v43 }
  0x44   : > { %2713 = vmatprep.mubr.msk.f32.mxu0 %vm296_vm0, %v217_v44  ;;  %2782 = vmatprep.mubr.msk.f32.mxu1 %vm296_vm0, %v263_v45 }
  0x47   : > { %2714 = vmatmul.mubr.msk.f32.gmra.mrb[20].mxu0 %vm296_vm0, %v218_v46  ;;  %2783 = vmatmul.mubr.msk.f32.gmra.mrb[20].mxu1 %vm296_vm0, %v264_v47 }
  0x48   : > { %2716 = vmatprep.mubr.msk.f32.mxu0 %vm296_vm0, %v219_v48  ;;  %2785 = vmatprep.mubr.msk.f32.mxu1 %vm296_vm0, %v265_v49 }
  0x4b   : > { %2717 = vmatmul.mubr.msk.f32.gmra.mrb[22].mxu0 %vm296_vm0, %v220_v50  ;;  %2786 = vmatmul.mubr.msk.f32.gmra.mrb[22].mxu1 %vm296_vm0, %v266_v51 }
  0x4c   : > { %2719 = vmatprep.mubr.msk.f32.mxu0 %vm296_vm0, %v221_v52  ;;  %2788 = vmatprep.mubr.msk.f32.mxu1 %vm296_vm0, %v267_v53 }
  0x4f   : > { %2720 = vmatmul.mubr.msk.f32.gmra.mrb[24].mxu0 %vm296_vm0, %v222_v54  ;;  %2789 = vmatmul.mubr.msk.f32.gmra.mrb[24].mxu1 %vm296_vm0, %v268_v55 }
  0x50   : > { %2722 = vmatprep.mubr.msk.f32.mxu0 %vm296_vm0, %v223_v56  ;;  %2791 = vmatprep.mubr.msk.f32.mxu1 %vm296_vm0, %v269_v57 }
  0x53   : > { %2723 = vmatmul.mubr.msk.f32.gmra.mrb[26].mxu0 %vm296_vm0, %v224_v58  ;;  %2792 = vmatmul.mubr.msk.f32.gmra.mrb[26].mxu1 %vm296_vm0, %v270_v59 }
  0x54   : > { %2725 = vmatprep.mubr.msk.f32.mxu0 %vm296_vm0, %v225_v60  ;;  %2794 = vmatprep.mubr.msk.f32.mxu1 %vm296_vm0, %v271_v61 }
  0x57   : > { %2726 = vmatmul.mubr.msk.f32.gmra.mrb[28].mxu0 %vm296_vm0, %v226_v62  ;;  %2795 = vmatmul.mubr.msk.f32.gmra.mrb[28].mxu1 %vm296_vm0, %v272_v63 }
  0x58   : > { %2728 = vmatprep.mubr.msk.f32.mxu0 %vm296_vm0, %v227_v0  ;;  %2797 = vmatprep.mubr.msk.f32.mxu1 %vm296_vm0, %v273_v1 }
  0x5b   : > { %2729 = vmatmul.mubr.msk.f32.gmra.mrb[30].mxu0 %vm296_vm0, %v228_v2  ;;  %2798 = vmatmul.mubr.msk.f32.gmra.mrb[30].mxu1 %vm296_vm0, %v274_v3 }
  0x5c   : > { %2731 = vmatprep.mubr.msk.f32.mxu0 %vm296_vm0, %v229_v4  ;;  %2800 = vmatprep.mubr.msk.f32.mxu1 %vm296_vm0, %v275_v5 }
  0x5f   : > { %2732 = vmatmul.mubr.msk.f32.gmra.mrb[32].mxu0 %vm296_vm0, %v230_v6  ;;  %2801 = vmatmul.mubr.msk.f32.gmra.mrb[32].mxu1 %vm296_vm0, %v276_v7 }
  0x60   : > { %2734 = vmatprep.mubr.msk.f32.mxu0 %vm296_vm0, %v231_v8  ;;  %2803 = vmatprep.mubr.msk.f32.mxu1 %vm296_vm0, %v277_v9 }
  0x63   : > { %2735 = vmatmul.mubr.msk.f32.gmra.mrb[34].mxu0 %vm296_vm0, %v232_v10  ;;  %2804 = vmatmul.mubr.msk.f32.gmra.mrb[34].mxu1 %vm296_vm0, %v278_v11 }
  0x64   : > { %2737 = vmatprep.mubr.msk.f32.mxu0 %vm296_vm0, %v233_v12  ;;  %2806 = vmatprep.mubr.msk.f32.mxu1 %vm296_vm0, %v279_v13 }
  0x67   : > { %2738 = vmatmul.mubr.msk.f32.gmra.mrb[36].mxu0 %vm296_vm0, %v234_v14  ;;  %2807 = vmatmul.mubr.msk.f32.gmra.mrb[36].mxu1 %vm296_vm0, %v280_v15 }
  0x68   : > { %2740 = vmatprep.mubr.msk.f32.mxu0 %vm296_vm0, %v235_v16  ;;  %2809 = vmatprep.mubr.msk.f32.mxu1 %vm296_vm0, %v281_v17 }
  0x6b   : > { %2741 = vmatmul.mubr.msk.f32.gmra.mrb[38].mxu0 %vm296_vm0, %v236_v18  ;;  %2810 = vmatmul.mubr.msk.f32.gmra.mrb[38].mxu1 %vm296_vm0, %v282_v19 }
  0x6c   : > { %2743 = vmatprep.mubr.msk.f32.mxu0 %vm296_vm0, %v237_v20  ;;  %2812 = vmatprep.mubr.msk.f32.mxu1 %vm296_vm0, %v283_v21 }
  0x6f   : > { %2744 = vmatmul.mubr.msk.f32.gmra.mrb[40].mxu0 %vm296_vm0, %v238_v22  ;;  %2813 = vmatmul.mubr.msk.f32.gmra.mrb[40].mxu1 %vm296_vm0, %v284_v23 }
  0x70   : > { %2746 = vmatprep.mubr.msk.f32.mxu0 %vm296_vm0, %v239_v24  ;;  %2815 = vmatprep.mubr.msk.f32.mxu1 %vm296_vm0, %v285_v25 }
  0x73   : > { %2747 = vmatmul.mubr.msk.f32.gmra.mrb[42].mxu0 %vm296_vm0, %v240_v26  ;;  %2816 = vmatmul.mubr.msk.f32.gmra.mrb[42].mxu1 %vm296_vm0, %v286_v27 }
  0x74   : > { %2749 = vmatprep.mubr.msk.f32.mxu0 %vm296_vm0, %v241_v28  ;;  %2818 = vmatprep.mubr.msk.f32.mxu1 %vm296_vm0, %v287_v29 }
  0x77   : > { %2750 = vmatmul.mubr.msk.f32.gmra.mrb[44].mxu0 %vm296_vm0, %v242_v30  ;;  %2819 = vmatmul.mubr.msk.f32.gmra.mrb[44].mxu1 %vm296_vm0, %v288_v31 }
  0xf2   : > { %v2685_v37 = vpop.f32.mrb[0].mxu0  ;;  %v2754_v38 = vpop.f32.mrb[0].mxu1 }
  0xf3   : > { %v3402_v39 = vadd.f32 %v2685_v37, %v3399_v36  ;;  %v3405_v40 = vadd.f32 %v2754_v38, %v3399_v36  ;;  %v639_v41 = vpop.f32.mrb[1].mxu0  ;;  %v869_v42 = vpop.f32.mrb[1].mxu1 }
  0xf4   : > { %v3410_v45 = vadd.f32 %v639_v41, %v3399_v36  ;;  %v3421_v52 = vadd.f32 %v869_v42, %v3399_v36 }
  0xf5   : > { %1192 = vadd.xlane.f32.xlu1 %v3405_v40  ;;  %1100 = vadd.xlane.f32.xlu0 %v3402_v39 }
  0xf6   : > { %v2688_v43 = vpop.f32.mrb[2].mxu0  ;;  %v2757_v44 = vpop.f32.mrb[2].mxu1 }
  0xf7   : > { %v3413_v46 = vadd.f32 %v2688_v43, %v3399_v36  ;;  %v649_v47 = vpop.f32.mrb[3].mxu0  ;;  %v879_v48 = vpop.f32.mrb[3].mxu1  ;;  %v3416_v49 = vadd.f32 %v2757_v44, %v3399_v36 }
  0xf8   : > { %v3426_v57 = vadd.f32 %v649_v47, %v3399_v36  ;;  %v3429_v58 = vadd.f32 %v879_v48, %v3399_v36 }
  0xf9   : > { %1104 = vadd.xlane.f32.xlu1 %v3413_v46  ;;  %1098 = vadd.xlane.f32.xlu0 %v3410_v45 }
  0xfa   : > { %v2691_v50 = vpop.f32.mrb[4].mxu0  ;;  %v2760_v51 = vpop.f32.mrb[4].mxu1 }
  0xfb   : > { %v659_v53 = vpop.f32.mrb[5].mxu0  ;;  %v889_v54 = vpop.f32.mrb[5].mxu1  ;;  %v3432_v61 = vadd.f32 %v2691_v50, %v3399_v36  ;;  %v3440_v3 = vadd.f32 %v2760_v51, %v3399_v36 }
  0xfc   : > { %v3435_v62 = vadd.f32 %v659_v53, %v3399_v36  ;;  %v3443_v4 = vadd.f32 %v889_v54, %v3399_v36 }
  0xfd   : > { %1196 = vadd.xlane.f32.xlu1 %v3416_v49  ;;  %1190 = vadd.xlane.f32.xlu0 %v3421_v52 }
  0xfe   : > { %v2694_v55 = vpop.f32.mrb[6].mxu0  ;;  %v2763_v56 = vpop.f32.mrb[6].mxu1  ;;  %5218 = vst [vmem:[#allocation6_spill] sm:$0xff] %v3443_v4 }
  0xff   : > { %v669_v59 = vpop.f32.mrb[7].mxu0  ;;  %v899_v60 = vpop.f32.mrb[7].mxu1  ;;  %v3448_v9 = vadd.f32 %v2694_v55, %v3399_v36  ;;  %v3456_v15 = vadd.f32 %v2763_v56, %v3399_v36 }
 0x100   : > { %v3451_v10 = vadd.f32 %v669_v59, %v3399_v36  ;;  %v3459_v16 = vadd.f32 %v899_v60, %v3399_v36 }
 0x101   : > { %1102 = vadd.xlane.f32.xlu1 %v3426_v57  ;;  %1194 = vadd.xlane.f32.xlu0 %v3429_v58  ;;  %5219 = vst [vmem:[#allocation7_spill] sm:$0xff] %v3448_v9  ;;  %5221 = vst [vmem:[#allocation9_spill] sm:$0xff] %v3456_v15 }
 0x102   : > { %v2697_v63 = vpop.f32.mrb[8].mxu0  ;;  %v2766_v0 = vpop.f32.mrb[8].mxu1  ;;  %5220 = vst [vmem:[#allocation8_spill] sm:$0xff] %v3451_v10  ;;  %5222 = vst [vmem:[#allocation10_spill] sm:$0xff] %v3459_v16 }
 0x103   : > { %v679_v1 = vpop.f32.mrb[9].mxu0  ;;  %v909_v2 = vpop.f32.mrb[9].mxu1  ;;  %v3464_v21 = vadd.f32 %v2697_v63, %v3399_v36  ;;  %v3476_v27 = vadd.f32 %v2766_v0, %v3399_v36 }
 0x104   : > { %v3467_v22 = vadd.f32 %v679_v1, %v3399_v36  ;;  %v3479_v28 = vadd.f32 %v909_v2, %v3399_v36 }
 0x105   : > { %1108 = vadd.xlane.f32.xlu1 %v3432_v61  ;;  %1106 = vadd.xlane.f32.xlu0 %v3435_v62  ;;  %5223 = vst [vmem:[#allocation11_spill] sm:$0xff] %v3464_v21  ;;  %5225 = vst [vmem:[#allocation13_spill] sm:$0xff] %v3476_v27 }
 0x106   : > { %v2700_v5 = vpop.f32.mrb[10].mxu0  ;;  %v2769_v6 = vpop.f32.mrb[10].mxu1  ;;  %5224 = vst [vmem:[#allocation12_spill] sm:$0xff] %v3467_v22  ;;  %5226 = vst [vmem:[#allocation14_spill] sm:$0xff] %v3479_v28 }
 0x107   : > { %v689_v7 = vpop.f32.mrb[11].mxu0  ;;  %v919_v8 = vpop.f32.mrb[11].mxu1  ;;  %v3492_v34 = vadd.f32 %v2700_v5, %v3399_v36  ;;  %v3508_v43 = vadd.f32 %v2769_v6, %v3399_v36 }
 0x108   : > { %v3495_v35 = vadd.f32 %v689_v7, %v3399_v36  ;;  %v3511_v44 = vadd.f32 %v919_v8, %v3399_v36 }
 0x109   : > { %1200 = vadd.xlane.f32.xlu1 %v3440_v3  ;;  %1198 = vadd.xlane.f32.xlu0 %v3443_v4  ;;  %5227 = vst [vmem:[#allocation15_spill] sm:$0xff] %v3492_v34  ;;  %5229 = vst [vmem:[#allocation17_spill] sm:$0xff] %v3508_v43 }
 0x10a   : > { %v2703_v11 = vpop.f32.mrb[12].mxu0  ;;  %v2772_v12 = vpop.f32.mrb[12].mxu1  ;;  %5228 = vst [vmem:[#allocation16_spill] sm:$0xff] %v3495_v35  ;;  %5230 = vst [vmem:[#allocation18_spill] sm:$0xff] %v3511_v44 }
 0x10b   : > { %v699_v13 = vpop.f32.mrb[13].mxu0  ;;  %v929_v14 = vpop.f32.mrb[13].mxu1  ;;  %v3524_v53 = vadd.f32 %v2703_v11, %v3399_v36  ;;  %v3540_v63 = vadd.f32 %v2772_v12, %v3399_v36 }
 0x10c   : > { %v3527_v54 = vadd.f32 %v699_v13, %v3399_v36  ;;  %v3543_v0 = vadd.f32 %v929_v14, %v3399_v36 }
 0x10d   : > { %1112 = vadd.xlane.f32.xlu1 %v3448_v9  ;;  %1110 = vadd.xlane.f32.xlu0 %v3451_v10  ;;  %5231 = vst [vmem:[#allocation19_spill] sm:$0xff] %v3524_v53  ;;  %5233 = vst [vmem:[#allocation21_spill] sm:$0xff] %v3540_v63 }
 0x10e   : > { %v2706_v17 = vpop.f32.mrb[14].mxu0  ;;  %v2775_v18 = vpop.f32.mrb[14].mxu1  ;;  %5232 = vst [vmem:[#allocation20_spill] sm:$0xff] %v3527_v54  ;;  %5234 = vst [vmem:[#allocation22_spill] sm:$0xff] %v3543_v0 }
 0x10f   : > { %v709_v19 = vpop.f32.mrb[15].mxu0  ;;  %v939_v20 = vpop.f32.mrb[15].mxu1  ;;  %v3556_v7 = vadd.f32 %v2706_v17, %v3399_v36  ;;  %v3572_v33 = vadd.f32 %v2775_v18, %v3399_v36 }
 0x110   : > { %v3559_v8 = vadd.f32 %v709_v19, %v3399_v36  ;;  %v3575_v17 = vadd.f32 %v939_v20, %v3399_v36 }
 0x111   : > { %1204 = vadd.xlane.f32.xlu1 %v3456_v15  ;;  %1202 = vadd.xlane.f32.xlu0 %v3459_v16  ;;  %5235 = vst [vmem:[#allocation23_spill] sm:$0xff] %v3556_v7  ;;  %5237 = vst [vmem:[#allocation25_spill] sm:$0xff] %v3572_v33 }
 0x112   : > { %v2709_v23 = vpop.f32.mrb[16].mxu0  ;;  %v3471_v24 = vpop.f32.mrb[16].mxu1  ;;  %5236 = vst [vmem:[#allocation24_spill] sm:$0xff] %v3559_v8  ;;  %5238 = vst [vmem:[#allocation26_spill] sm:$0xff] %v3575_v17 }
 0x113   : > { %v719_v25 = vpop.f32.mrb[17].mxu0  ;;  %v3473_v26 = vpop.f32.mrb[17].mxu1 }
 0x114   : > { %v3591_v18 = vadd.f32 %v719_v25, %v3399_v36 }
 0x115   : > { %1116 = vadd.xlane.f32.xlu1 %v3464_v21  ;;  %1114 = vadd.xlane.f32.xlu0 %v3467_v22 }
 0x116   : > { %v3483_v29 = vpop.f32.mrb[18].mxu0  ;;  %v3485_v30 = vpop.f32.mrb[18].mxu1  ;;  %5240 = vst [vmem:[#allocation28_spill] sm:$0xff] %v3591_v18 }
 0x117   : > { %v3487_v31 = vpop.f32.mrb[19].mxu0  ;;  %v3489_v32 = vpop.f32.mrb[19].mxu1 }
 0x119   : > { %1208 = vadd.xlane.f32.xlu1 %v3476_v27  ;;  %1206 = vadd.xlane.f32.xlu0 %v3479_v28 }
 0x11a   : > { %v3499_v37 = vpop.f32.mrb[20].mxu0  ;;  %v3501_v38 = vpop.f32.mrb[20].mxu1 }
 0x11b   : > { %v3503_v41 = vpop.f32.mrb[21].mxu0  ;;  %v3505_v42 = vpop.f32.mrb[21].mxu1 }
 0x11d   : > { %1120 = vadd.xlane.f32.xlu1 %v3492_v34  ;;  %1118 = vadd.xlane.f32.xlu0 %v3495_v35 }
 0x11e   : > { %v3515_v47 = vpop.f32.mrb[22].mxu0  ;;  %v3517_v48 = vpop.f32.mrb[22].mxu1 }
 0x11f   : > { %v3519_v50 = vpop.f32.mrb[23].mxu0  ;;  %v3521_v51 = vpop.f32.mrb[23].mxu1 }
 0x121   : > { %1212 = vadd.xlane.f32.xlu1 %v3508_v43  ;;  %1210 = vadd.xlane.f32.xlu0 %v3511_v44  ;;  %v3605_v43 = vadd.f32 %v3471_v24, %v3399_v36  ;;  %v3623_v24 = vadd.f32 %v3483_v29, %v3399_v36  ;;  %v3641_v29 = vadd.f32 %v3485_v30, %v3399_v36 }
 0x122   : > { %v3531_v55 = vpop.f32.mrb[24].mxu0  ;;  %v3533_v56 = vpop.f32.mrb[24].mxu1  ;;  %v3659_v30 = vadd.f32 %v3499_v37, %v3399_v36  ;;  %v3677_v37 = vadd.f32 %v3501_v38, %v3399_v36  ;;  %v3695_v38 = vadd.f32 %v3515_v47, %v3399_v36  ;;  %v3713_v47 = vadd.f32 %v3517_v48, %v3399_v36 }
 0x123   : > { %v3535_v59 = vpop.f32.mrb[25].mxu0  ;;  %v3537_v60 = vpop.f32.mrb[25].mxu1  ;;  %5241 = vst [vmem:[#allocation29_spill] sm:$0xff] %v3605_v43  ;;  %5243 = vst [vmem:[#allocation31_spill] sm:$0xff] %v3623_v24  ;;  %v3733_v48 = vadd.f32 %v3533_v56, %v3399_v36 }
 0x124   : > { %5245 = vst [vmem:[#allocation33_spill] sm:$0xff] %v3641_v29  ;;  %5247 = vst [vmem:[#allocation35_spill] sm:$0xff] %v3659_v30 }
 0x125   : > { %1124 = vadd.xlane.f32.xlu1 %v3524_v53  ;;  %1122 = vadd.xlane.f32.xlu0 %v3527_v54  ;;  %v3588_v53 = vadd.f32 %v2709_v23, %v3399_v36  ;;  %v3609_v23 = vadd.f32 %v3473_v26, %v3399_v36  ;;  %v3627_v26 = vadd.f32 %v3487_v31, %v3399_v36 }
 0x126   : > { %v3547_v1 = vpop.f32.mrb[26].mxu0  ;;  %v3549_v2 = vpop.f32.mrb[26].mxu1  ;;  %v3645_v31 = vadd.f32 %v3489_v32, %v3399_v36  ;;  %v3663_v32 = vadd.f32 %v3503_v41, %v3399_v36  ;;  %5249 = vst [vmem:[#allocation37_spill] sm:$0xff] %v3677_v37  ;;  %v3681_v41 = vadd.f32 %v3505_v42, %v3399_v36  ;;  %v3699_v42 = vadd.f32 %v3519_v50, %v3399_v36 }
 0x127   : > { %v3551_v5 = vpop.f32.mrb[27].mxu0  ;;  %v3553_v6 = vpop.f32.mrb[27].mxu1  ;;  %5239 = vst [vmem:[#allocation27_spill] sm:$0xff] %v3588_v53  ;;  %5242 = vst [vmem:[#allocation30_spill] sm:$0xff] %v3609_v23  ;;  %v3717_v50 = vadd.f32 %v3521_v51, %v3399_v36  ;;  %v3737_v51 = vadd.f32 %v3537_v60, %v3399_v36  ;;  %v3753_v56 = vadd.f32 %v3549_v2, %v3399_v36 }
 0x128   : > { %5244 = vst [vmem:[#allocation32_spill] sm:$0xff] %v3627_v26  ;;  %5246 = vst [vmem:[#allocation34_spill] sm:$0xff] %v3645_v31  ;;  %v3757_v60 = vadd.f32 %v3553_v6, %v3399_v36 }
 0x129   : > { %1216 = vadd.xlane.f32.xlu1 %v3540_v63  ;;  %1214 = vadd.xlane.f32.xlu0 %v3543_v0  ;;  %5248 = vst [vmem:[#allocation36_spill] sm:$0xff] %v3663_v32  ;;  %5250 = vst [vmem:[#allocation38_spill] sm:$0xff] %v3681_v41 }
 0x12a   : > { %v3563_v11 = vpop.f32.mrb[28].mxu0  ;;  %v3565_v12 = vpop.f32.mrb[28].mxu1 }
 0x12b   : > { %v3567_v13 = vpop.f32.mrb[29].mxu0  ;;  %v3569_v14 = vpop.f32.mrb[29].mxu1  ;;  %v3773_v2 = vadd.f32 %v3565_v12, %v3399_v36 }
 0x12c   : > { %v3777_v6 = vadd.f32 %v3569_v14, %v3399_v36 }
 0x12d   : > { %1128 = vadd.xlane.f32.xlu1 %v3556_v7  ;;  %1126 = vadd.xlane.f32.xlu0 %v3559_v8 }
 0x12e   : > { %v3579_v19 = vpop.f32.mrb[30].mxu0  ;;  %v3581_v0 = vpop.f32.mrb[30].mxu1 }
 0x12f   : > { %v3583_v63 = vpop.f32.mrb[31].mxu0  ;;  %v3585_v54 = vpop.f32.mrb[31].mxu1  ;;  %v3793_v12 = vadd.f32 %v3581_v0, %v3399_v36 }
 0x130   : > { %v3797_v14 = vadd.f32 %v3585_v54, %v3399_v36 }
 0x131   : > { %1220 = vadd.xlane.f32.xlu1 %v3572_v33  ;;  %1218 = vadd.xlane.f32.xlu0 %v3575_v17 }
 0x132   : > { %v3595_v20 = vpop.f32.mrb[32].mxu0  ;;  %v3597_v8 = vpop.f32.mrb[32].mxu1 }
 0x133   : > { %v3599_v7 = vpop.f32.mrb[33].mxu0  ;;  %v3601_v44 = vpop.f32.mrb[33].mxu1  ;;  %v3813_v54 = vadd.f32 %v3597_v8, %v3399_v36 }
 0x134   : > { %v3817_v0 = vadd.f32 %v3601_v44, %v3399_v36 }
 0x135   : > { %1132 = vadd.xlane.f32.xlu1 %v3588_v53  ;;  %1130 = vadd.xlane.f32.xlu0 %v3591_v18  ;;  %5251 = vst [vmem:[#allocation39_spill] sm:$0xff] %v3813_v54 }
 0x136   : > { %v3613_v25 = vpop.f32.mrb[34].mxu0  ;;  %v3615_v17 = vpop.f32.mrb[34].mxu1  ;;  %5252 = vst [vmem:[#allocation40_spill] sm:$0xff] %v3817_v0 }
 0x137   : > { %v3617_v33 = vpop.f32.mrb[35].mxu0  ;;  %v3619_v35 = vpop.f32.mrb[35].mxu1  ;;  %v3833_v44 = vadd.f32 %v3615_v17, %v3399_v36 }
 0x138   : > { %v3837_v8 = vadd.f32 %v3619_v35, %v3399_v36 }
 0x139   : > { %1224 = vadd.xlane.f32.xlu1 %v3605_v43  ;;  %1222 = vadd.xlane.f32.xlu0 %v3609_v23  ;;  %5255 = vst [vmem:[#allocation43_spill] sm:$0xff] %v3833_v44 }
 0x13a   : > { %v3631_v18 = vpop.f32.mrb[36].mxu0  ;;  %v3633_v53 = vpop.f32.mrb[36].mxu1  ;;  %5256 = vst [vmem:[#allocation44_spill] sm:$0xff] %v3837_v8 }
 0x13b   : > { %v3635_v34 = vpop.f32.mrb[37].mxu0  ;;  %v3637_v28 = vpop.f32.mrb[37].mxu1  ;;  %v3853_v35 = vadd.f32 %v3633_v53, %v3399_v36 }
 0x13d   : > { %1136 = vadd.xlane.f32.xlu1 %v3623_v24  ;;  %1134 = vadd.xlane.f32.xlu0 %v3627_v26  ;;  %5259 = vst [vmem:[#allocation47_spill] sm:$0xff] %v3853_v35 }
 0x13e   : > { %v3649_v23 = vpop.f32.mrb[38].mxu0  ;;  %v3651_v43 = vpop.f32.mrb[38].mxu1 }
 0x13f   : > { %v3653_v27 = vpop.f32.mrb[39].mxu0  ;;  %v3655_v22 = vpop.f32.mrb[39].mxu1 }
 0x141   : > { %1228 = vadd.xlane.f32.xlu1 %v3641_v29  ;;  %1226 = vadd.xlane.f32.xlu0 %v3645_v31 }
 0x142   : > { %v3667_v26 = vpop.f32.mrb[40].mxu0  ;;  %v3669_v24 = vpop.f32.mrb[40].mxu1 }
 0x143   : > { %v3671_v21 = vpop.f32.mrb[41].mxu0  ;;  %v3673_v16 = vpop.f32.mrb[41].mxu1 }
 0x145   : > { %1140 = vadd.xlane.f32.xlu1 %v3659_v30  ;;  %1138 = vadd.xlane.f32.xlu0 %v3663_v32 }
 0x146   : > { %v3685_v31 = vpop.f32.mrb[42].mxu0  ;;  %v3687_v29 = vpop.f32.mrb[42].mxu1 }
 0x147   : > { %v3689_v15 = vpop.f32.mrb[43].mxu0  ;;  %v3691_v10 = vpop.f32.mrb[43].mxu1 }
 0x149   : > { %1232 = vadd.xlane.f32.xlu1 %v3677_v37  ;;  %1230 = vadd.xlane.f32.xlu0 %v3681_v41  ;;  %v3723_v41 = vadd.f32 %v3531_v55, %v3399_v36  ;;  %v3727_v37 = vadd.f32 %v3535_v59, %v3399_v36  ;;  %v3743_v55 = vadd.f32 %v3547_v1, %v3399_v36 }
 0x14a   : > { %v3703_v32 = vpop.f32.mrb[44].mxu0  ;;  %v3705_v30 = vpop.f32.mrb[44].mxu1  ;;  %v3747_v59 = vadd.f32 %v3551_v5, %v3399_v36  ;;  %v3763_v1 = vadd.f32 %v3563_v11, %v3399_v36  ;;  %v3767_v5 = vadd.f32 %v3567_v13, %v3399_v36  ;;  %v3783_v11 = vadd.f32 %v3579_v19, %v3399_v36 }
 0x14b   : > { %v3707_v9 = vpop.f32.mrb[45].mxu0  ;;  %v3709_v4 = vpop.f32.mrb[45].mxu1  ;;  %v3787_v13 = vadd.f32 %v3583_v63, %v3399_v36  ;;  %v3803_v63 = vadd.f32 %v3595_v20, %v3399_v36  ;;  %v3807_v19 = vadd.f32 %v3599_v7, %v3399_v36  ;;  %v3823_v7 = vadd.f32 %v3613_v25, %v3399_v36 }
 0x14c   : > { %v3827_v20 = vadd.f32 %v3617_v33, %v3399_v36  ;;  %v3843_v33 = vadd.f32 %v3631_v18, %v3399_v36  ;;  %v3847_v25 = vadd.f32 %v3635_v34, %v3399_v36 }
 0x14d   : > { %1144 = vadd.xlane.f32.xlu1 %v3695_v38  ;;  %1142 = vadd.xlane.f32.xlu0 %v3699_v42  ;;  %5253 = vst [vmem:[#allocation41_spill] sm:$0xff] %v3823_v7 }
 0x14e   : > { %5254 = vst [vmem:[#allocation42_spill] sm:$0xff] %v3827_v20  ;;  %5257 = vst [vmem:[#allocation45_spill] sm:$0xff] %v3843_v33 }
 0x14f   : > { %5258 = vst [vmem:[#allocation46_spill] sm:$0xff] %v3847_v25 }
 0x151   : > { %1236 = vadd.xlane.f32.xlu1 %v3713_v47  ;;  %1234 = vadd.xlane.f32.xlu0 %v3717_v50 }
 0x155   : > { %1148 = vadd.xlane.f32.xlu1 %v3723_v41  ;;  %1146 = vadd.xlane.f32.xlu0 %v3727_v37 }
 0x159   : > { %1240 = vadd.xlane.f32.xlu1 %v3733_v48  ;;  %1238 = vadd.xlane.f32.xlu0 %v3737_v51 }
 0x15d   : > { %1152 = vadd.xlane.f32.xlu1 %v3743_v55  ;;  %1150 = vadd.xlane.f32.xlu0 %v3747_v59 }
 0x161   : > { %1244 = vadd.xlane.f32.xlu1 %v3753_v56  ;;  %1242 = vadd.xlane.f32.xlu0 %v3757_v60 }
 0x165   : > { %1156 = vadd.xlane.f32.xlu1 %v3763_v1  ;;  %1154 = vadd.xlane.f32.xlu0 %v3767_v5 }
 0x169   : > { %1248 = vadd.xlane.f32.xlu1 %v3773_v2  ;;  %1246 = vadd.xlane.f32.xlu0 %v3777_v6 }
 0x16d   : > { %1160 = vadd.xlane.f32.xlu1 %v3783_v11  ;;  %1158 = vadd.xlane.f32.xlu0 %v3787_v13 }
 0x171   : > { %1252 = vadd.xlane.f32.xlu1 %v3793_v12  ;;  %1250 = vadd.xlane.f32.xlu0 %v3797_v14 }
 0x175   : > { %1164 = vadd.xlane.f32.xlu1 %v3803_v63  ;;  %1162 = vadd.xlane.f32.xlu0 %v3807_v19 }
 0x179   : > { %1256 = vadd.xlane.f32.xlu1 %v3813_v54  ;;  %1254 = vadd.xlane.f32.xlu0 %v3817_v0 }
 0x17d   : > { %1168 = vadd.xlane.f32.xlu1 %v3823_v7  ;;  %1166 = vadd.xlane.f32.xlu0 %v3827_v20  ;;  %v3857_v20 = vadd.f32 %v3637_v28, %v3399_v36  ;;  %v3951_v7 = vadd.f32 %v3705_v30, %v3399_v36 }
 0x17f   : > { %5260 = vst [vmem:[#allocation48_spill] sm:$0xff] %v3857_v20  ;;  %5274 = vst [vmem:[#allocation62_spill] sm:$0xff] %v3951_v7 }
 0x181   : > { %1260 = vadd.xlane.f32.xlu1 %v3833_v44  ;;  %1258 = vadd.xlane.f32.xlu0 %v3837_v8  ;;  %v3863_v44 = vadd.f32 %v3649_v23, %v3399_v36  ;;  %v3867_v8 = vadd.f32 %v3653_v27, %v3399_v36 }
 0x182   : > { %v1193_v17 = vpop.xlane.xlu1 %1192  ;;  %v1101_v0 = vpop.xlane.xlu0 %1100 }
 0x183   : > { %5261 = vst [vmem:[#allocation49_spill] sm:$0xff] %v3863_v44  ;;  %5262 = vst [vmem:[#allocation50_spill] sm:$0xff] %v3867_v8 }
 0x185   : > { %1172 = vadd.xlane.f32.xlu1 %v3843_v33  ;;  %1170 = vadd.xlane.f32.xlu0 %v3847_v25  ;;  %v3875_v25 = vadd.f32 %v3651_v43, %v3399_v36  ;;  %v3879_v33 = vadd.f32 %v3655_v22, %v3399_v36 }
 0x186   : > { %v1105_v34 = vpop.xlane.xlu1 %1104  ;;  %v1099_v18 = vpop.xlane.xlu0 %1098 }
 0x187   : > { %5263 = vst [vmem:[#allocation51_spill] sm:$0xff] %v3875_v25  ;;  %5264 = vst [vmem:[#allocation52_spill] sm:$0xff] %v3879_v33 }
 0x189   : > { %1264 = vadd.xlane.f32.xlu1 %v3853_v35  ;;  %1262 = vadd.xlane.f32.xlu0 %v3857_v20  ;;  %v3885_v20 = vadd.f32 %v3667_v26, %v3399_v36  ;;  %v3889_v35 = vadd.f32 %v3671_v21, %v3399_v36 }
 0x18a   : > { %v3871_v28 = vpop.xlane.xlu1 %1196  ;;  %v1191_v53 = vpop.xlane.xlu0 %1190 }
 0x18b   : > { %5265 = vst [vmem:[#allocation53_spill] sm:$0xff] %v3885_v20  ;;  %5266 = vst [vmem:[#allocation54_spill] sm:$0xff] %v3889_v35  ;;  %v1329_v54 = vmul.f32 0.0078125, %v1191_v53 }
 0x18d   : > { %1176 = vadd.xlane.f32.xlu1 %v3863_v44  ;;  %1174 = vadd.xlane.f32.xlu0 %v3867_v8  ;;  %v3895_v44 = vadd.f32 %v3669_v24, %v3399_v36  ;;  %v3899_v8 = vadd.f32 %v3673_v16, %v3399_v36  ;;  %v3913_v24 = vadd.f32 %v3689_v15, %v3399_v36 }
 0x18e   : > { %v1103_v27 = vpop.xlane.xlu1 %1102  ;;  %v1195_v23 = vpop.xlane.xlu0 %1194 }
 0x18f   : > { %5267 = vst [vmem:[#allocation55_spill] sm:$0xff] %v3895_v44  ;;  %5268 = vst [vmem:[#allocation56_spill] sm:$0xff] %v3899_v8 }
 0x190   : > { %5270 = vst [vmem:[#allocation58_spill] sm:$0xff] %v3913_v24 }
 0x191   : > { %1268 = vadd.xlane.f32.xlu1 %v3875_v25  ;;  %1266 = vadd.xlane.f32.xlu0 %v3879_v33  ;;  %v3909_v33 = vadd.f32 %v3685_v31, %v3399_v36  ;;  %v3927_v31 = vadd.f32 %v3691_v10, %v3399_v36  ;;  %v1283_v25 = vmul.f32 0.0078125, %v1099_v18 }
 0x192   : > { %v1109_v22 = vpop.xlane.xlu1 %1108  ;;  %v1107_v43 = vpop.xlane.xlu0 %1106 }
 0x193   : > { %5269 = vst [vmem:[#allocation57_spill] sm:$0xff] %v3909_v33  ;;  %5272 = vst [vmem:[#allocation60_spill] sm:$0xff] %v3927_v31  ;;  %v3967_v30 = vsub.f32 %v3410_v45, %v1283_v25  ;;  %v3983_v25 = vsub.f32 %v3421_v52, %v1329_v54  ;;  %v1288_v54 = vmul.f32 0.0078125, %v1109_v22 }
 0x195   : > { %1180 = vadd.xlane.f32.xlu1 %v3885_v20  ;;  %1178 = vadd.xlane.f32.xlu0 %v3889_v35  ;;  %v3923_v35 = vadd.f32 %v3687_v29, %v3399_v36  ;;  %v3941_v29 = vadd.f32 %v3707_v9, %v3399_v36  ;;  %v1330_v9 = vmul.f32 0.0078125, %v1193_v17  ;;  %v1467_v45 = vmul.f32 %v3967_v30, %v3967_v30 }
 0x196   : > { %v3903_v21 = vpop.xlane.xlu1 %1200  ;;  %v3905_v26 = vpop.xlane.xlu0 %1198  ;;  %v4015_v22 = vsub.f32 %v3432_v61, %v1288_v54 }
 0x197   : > { %5271 = vst [vmem:[#allocation59_spill] sm:$0xff] %v3923_v35  ;;  %5273 = vst [vmem:[#allocation61_spill] sm:$0xff] %v3941_v29  ;;  %v3976_v17 = vsub.f32 %v3405_v40, %v1330_v9  ;;  %v1331_v9 = vmul.f32 0.0078125, %v1195_v23 }
 0x198   : > { %5276 = vst [vmem:[#allocation64_spill] sm:$0xff] %v4015_v22 }
 0x199   : > { %1272 = vadd.xlane.f32.xlu1 %v3895_v44  ;;  %1270 = vadd.xlane.f32.xlu0 %v3899_v8  ;;  %v3937_v8 = vadd.f32 %v3703_v32, %v3399_v36  ;;  %v3955_v32 = vadd.f32 %v3709_v4, %v3399_v36  ;;  %v1286_v36 = vmul.f32 0.0078125, %v1105_v34  ;;  %v1514_v40 = vmul.f32 %v3976_v17, %v3976_v17 }
 0x19a   : > { %v3917_v16 = vpop.xlane.xlu1 %1112  ;;  %v3919_v20 = vpop.xlane.xlu0 %1110 }
 0x19b   : > { %5275 = vst [vmem:[#allocation63_spill] sm:$0xff] %v3955_v32 }
 0x19d   : > { %1184 = vadd.xlane.f32.xlu1 %v3909_v33  ;;  %1182 = vadd.xlane.f32.xlu0 %v3913_v24  ;;  %v1284_v24 = vmul.f32 0.0078125, %v1101_v0 }
 0x19e   : > { %v3931_v15 = vpop.xlane.xlu1 %1204  ;;  %v3933_v44 = vpop.xlane.xlu0 %1202 }
 0x19f   : > { %v3964_v0 = vsub.f32 %v3402_v39, %v1284_v24  ;;  %v1332_v24 = vmul.f32 0.0078125, %v3871_v28  ;;  %v4008_v28 = vsub.f32 %v3429_v58, %v1331_v9  ;;  %v1334_v58 = vmul.f32 0.0078125, %v3903_v21  ;;  %v5279_v9 = vld [vmem:[#allocation6_spill] sm:$0xff] }
 0x1a1   : > { %1276 = vadd.xlane.f32.xlu1 %v3923_v35  ;;  %1274 = vadd.xlane.f32.xlu0 %v3927_v31  ;;  %v1468_v39 = vmul.f32 %v3964_v0, %v3964_v0 }
 0x1a2   : > { %v3945_v10 = vpop.xlane.xlu1 %1116  ;;  %v3947_v33 = vpop.xlane.xlu0 %1114 }
 0x1a5   : > { %1188 = vadd.xlane.f32.xlu1 %v3937_v8  ;;  %1186 = vadd.xlane.f32.xlu0 %v3941_v29  ;;  %v1285_v29 = vmul.f32 0.0078125, %v1103_v27  ;;  %v3992_v27 = vsub.f32 %v3413_v46, %v1286_v36  ;;  %v4005_v46 = vsub.f32 %v3416_v49, %v1332_v24  ;;  %v1472_v24 = vmul.f32 %v4015_v22, %v4015_v22 }
 0x1a6   : > { %v3959_v31 = vpop.xlane.xlu1 %1208  ;;  %v3961_v35 = vpop.xlane.xlu0 %1206 }
 0x1a7   : > { %v3998_v52 = vsub.f32 %v3426_v57, %v1285_v29  ;;  %v1470_v23 = vmul.f32 %v3992_v27, %v3992_v27  ;;  %v1516_v36 = vmul.f32 %v4005_v46, %v4005_v46 }
 0x1a9   : > { %1280 = vadd.xlane.f32.xlu1 %v3951_v7  ;;  %1278 = vadd.xlane.f32.xlu0 %v3955_v32  ;;  %v1513_v32 = vmul.f32 %v3983_v25, %v3983_v25  ;;  %v1469_v57 = vmul.f32 %v3998_v52, %v3998_v52 }
 0x1aa   : > { %v3971_v4 = vpop.xlane.xlu1 %1120  ;;  %v3973_v18 = vpop.xlane.xlu0 %1118 }
 0x1ad   : > { %1561 = vadd.xlane.f32.xlu1 %v1468_v39  ;;  %1559 = vadd.xlane.f32.xlu0 %v1467_v45  ;;  %v1287_v39 = vmul.f32 0.0078125, %v1107_v43 }
 0x1ae   : > { %v3985_v34 = vpop.xlane.xlu1 %1212  ;;  %v3987_v53 = vpop.xlane.xlu0 %1210 }
 0x1af   : > { %v4018_v43 = vsub.f32 %v3435_v62, %v1287_v39  ;;  %v1290_v39 = vmul.f32 0.0078125, %v3917_v16 }
 0x1b1   : > { %1653 = vadd.xlane.f32.xlu1 %v1514_v40  ;;  %1651 = vadd.xlane.f32.xlu0 %v1513_v32  ;;  %5277 = vst [vmem:[#allocation65_spill] sm:$0xff] %v4018_v43  ;;  %v1333_v32 = vmul.f32 0.0078125, %v3905_v26  ;;  %v1515_v40 = vmul.f32 %v4008_v28, %v4008_v28  ;;  %v1471_v21 = vmul.f32 %v4018_v43, %v4018_v43  ;;  %v5281_v43 = vld [vmem:[#allocation7_spill] sm:$0xff] }
 0x1b2   : > { %v4000_v45 = vpop.xlane.xlu1 %1124  ;;  %v4002_v7 = vpop.xlane.xlu0 %1122  ;;  %v4039_v26 = vsub.f32 %v3440_v3, %v1334_v58  ;;  %v4053_v3 = vsub.f32 %v5281_v43, %v1290_v39  ;;  %v5283_v58 = vld [vmem:[#allocation8_spill] sm:$0xff]  ;;  %v1292_v39 = vmul.f32 0.0078125, %v3945_v10 }
 0x1b3   : > { %v4042_v54 = vsub.f32 %v5279_v9, %v1333_v32 }
 0x1b4   : > { %5278 = vst [vmem:[#allocation66_spill] sm:$0xff] %v4039_v26  ;;  %5282 = vst [vmem:[#allocation7_spill] sm:$0xff] %v4053_v3  ;;  %v1518_v16 = vmul.f32 %v4039_v26, %v4039_v26 }
 0x1b5   : > { %1565 = vadd.xlane.f32.xlu1 %v1470_v23  ;;  %1563 = vadd.xlane.f32.xlu0 %v1469_v57  ;;  %5280 = vst [vmem:[#allocation6_spill] sm:$0xff] %v4042_v54  ;;  %v1289_v23 = vmul.f32 0.0078125, %v3919_v20  ;;  %v1336_v57 = vmul.f32 0.0078125, %v3931_v15  ;;  %v1517_v20 = vmul.f32 %v4042_v54, %v4042_v54  ;;  %v5285_v15 = vld [vmem:[#allocation9_spill] sm:$0xff]  ;;  %v1293_v54 = vmul.f32 0.0078125, %v3973_v18 }
 0x1b6   : > { %v4020_v29 = vpop.xlane.xlu1 %1216  ;;  %v4022_v49 = vpop.xlane.xlu0 %1214 }
 0x1b7   : > { %v4056_v32 = vsub.f32 %v5283_v58, %v1289_v23  ;;  %v1291_v23 = vmul.f32 0.0078125, %v3947_v33  ;;  %v1474_v58 = vmul.f32 %v4053_v3, %v4053_v3 }
 0x1b9   : > { %1657 = vadd.xlane.f32.xlu1 %v1516_v36  ;;  %1655 = vadd.xlane.f32.xlu0 %v1515_v40  ;;  %v1335_v36 = vmul.f32 0.0078125, %v3933_v44  ;;  %5284 = vst [vmem:[#allocation8_spill] sm:$0xff] %v4056_v32  ;;  %v4063_v44 = vsub.f32 %v5285_v15, %v1336_v57  ;;  %v5289_v15 = vld [vmem:[#allocation11_spill] sm:$0xff] }
 0x1ba   : > { %v4030_v61 = vpop.xlane.xlu1 %1128  ;;  %v4032_v62 = vpop.xlane.xlu0 %1126  ;;  %v4087_v33 = vsub.f32 %v5289_v15, %v1292_v39  ;;  %v5295_v15 = vld [vmem:[#allocation14_spill] sm:$0xff] }
 0x1bb   : > { %5286 = vst [vmem:[#allocation9_spill] sm:$0xff] %v4063_v44 }
 0x1bc   : > { %5290 = vst [vmem:[#allocation11_spill] sm:$0xff] %v4087_v33 }
 0x1bd   : > { %1569 = vadd.xlane.f32.xlu1 %v1472_v24  ;;  %1567 = vadd.xlane.f32.xlu0 %v1471_v21  ;;  %v5287_v24 = vld [vmem:[#allocation10_spill] sm:$0xff] }
 0x1be   : > { %v4048_v40 = vpop.xlane.xlu1 %1220  ;;  %v4050_v22 = vpop.xlane.xlu0 %1218  ;;  %v4066_v21 = vsub.f32 %v5287_v24, %v1335_v36  ;;  %v5291_v24 = vld [vmem:[#allocation12_spill] sm:$0xff] }
 0x1bf   : > { %v4090_v3 = vsub.f32 %v5291_v24, %v1291_v23 }
 0x1c0   : > { %5288 = vst [vmem:[#allocation10_spill] sm:$0xff] %v4066_v21  ;;  %v1519_v10 = vmul.f32 %v4066_v21, %v4066_v21  ;;  %v5293_v21 = vld [vmem:[#allocation13_spill] sm:$0xff] }
 0x1c1   : > { %1661 = vadd.xlane.f32.xlu1 %v1518_v16  ;;  %1659 = vadd.xlane.f32.xlu0 %v1517_v20  ;;  %v1473_v16 = vmul.f32 %v4056_v32, %v4056_v32  ;;  %v1520_v20 = vmul.f32 %v4063_v44, %v4063_v44  ;;  %5292 = vst [vmem:[#allocation12_spill] sm:$0xff] %v4090_v3  ;;  %v1338_v32 = vmul.f32 0.0078125, %v3959_v31 }
 0x1c2   : > { %v4068_v9 = vpop.xlane.xlu1 %1132  ;;  %v4070_v43 = vpop.xlane.xlu0 %1130  ;;  %v1476_v31 = vmul.f32 %v4087_v33, %v4087_v33 }
 0x1c3   : > { %v4101_v39 = vsub.f32 %v5293_v21, %v1338_v32  ;;  %v1340_v21 = vmul.f32 0.0078125, %v3985_v34 }
 0x1c5   : > { %1573 = vadd.xlane.f32.xlu1 %v1474_v58  ;;  %1571 = vadd.xlane.f32.xlu0 %v1473_v16  ;;  %v1337_v58 = vmul.f32 0.0078125, %v3961_v35  ;;  %v1294_v16 = vmul.f32 0.0078125, %v3971_v4  ;;  %5294 = vst [vmem:[#allocation13_spill] sm:$0xff] %v4101_v39  ;;  %v1475_v35 = vmul.f32 %v4090_v3, %v4090_v3  ;;  %v5297_v4 = vld [vmem:[#allocation15_spill] sm:$0xff]  ;;  %v1341_v3 = vmul.f32 0.0078125, %v4022_v49 }
 0x1c6   : > { %v4078_v57 = vpop.xlane.xlu1 %1224  ;;  %v4080_v36 = vpop.xlane.xlu0 %1222 }
 0x1c7   : > { %v4104_v23 = vsub.f32 %v5295_v15, %v1337_v58  ;;  %v4111_v18 = vsub.f32 %v5297_v4, %v1294_v16  ;;  %v1339_v58 = vmul.f32 0.0078125, %v3987_v53  ;;  %v1522_v15 = vmul.f32 %v4101_v39, %v4101_v39  ;;  %v5301_v4 = vld [vmem:[#allocation17_spill] sm:$0xff] }
 0x1c8   : > { %v4135_v53 = vsub.f32 %v5301_v4, %v1340_v21  ;;  %v5307_v4 = vld [vmem:[#allocation20_spill] sm:$0xff] }
 0x1c9   : > { %1665 = vadd.xlane.f32.xlu1 %v1520_v20  ;;  %1663 = vadd.xlane.f32.xlu0 %v1519_v10  ;;  %5296 = vst [vmem:[#allocation14_spill] sm:$0xff] %v4104_v23  ;;  %5298 = vst [vmem:[#allocation15_spill] sm:$0xff] %v4111_v18  ;;  %v5299_v20 = vld [vmem:[#allocation16_spill] sm:$0xff] }
 0x1ca   : > { %v4096_v44 = vpop.xlane.xlu1 %1136  ;;  %v4098_v26 = vpop.xlane.xlu0 %1134  ;;  %v4114_v10 = vsub.f32 %v5299_v20, %v1293_v54  ;;  %5302 = vst [vmem:[#allocation17_spill] sm:$0xff] %v4135_v53  ;;  %v5303_v20 = vld [vmem:[#allocation18_spill] sm:$0xff] }
 0x1cb   : > { %v4138_v39 = vsub.f32 %v5303_v20, %v1339_v58 }
 0x1cc   : > { %5300 = vst [vmem:[#allocation16_spill] sm:$0xff] %v4114_v10  ;;  %v1477_v34 = vmul.f32 %v4114_v10, %v4114_v10  ;;  %v5305_v10 = vld [vmem:[#allocation19_spill] sm:$0xff] }
 0x1cd   : > { %1577 = vadd.xlane.f32.xlu1 %v1476_v31  ;;  %1575 = vadd.xlane.f32.xlu0 %v1475_v35  ;;  %v1521_v31 = vmul.f32 %v4104_v23, %v4104_v23  ;;  %v1478_v35 = vmul.f32 %v4111_v18, %v4111_v18  ;;  %5304 = vst [vmem:[#allocation18_spill] sm:$0xff] %v4138_v39  ;;  %v1296_v23 = vmul.f32 0.0078125, %v4000_v45 }
 0x1ce   : > { %v4116_v24 = vpop.xlane.xlu1 %1228  ;;  %v4118_v32 = vpop.xlane.xlu0 %1226  ;;  %v1524_v45 = vmul.f32 %v4135_v53, %v4135_v53 }
 0x1cf   : > { %v4149_v21 = vsub.f32 %v5305_v10, %v1296_v23  ;;  %v1298_v10 = vmul.f32 0.0078125, %v4030_v61 }
 0x1d1   : > { %1669 = vadd.xlane.f32.xlu1 %v1522_v15  ;;  %1667 = vadd.xlane.f32.xlu0 %v1521_v31  ;;  %v1295_v15 = vmul.f32 0.0078125, %v4002_v7  ;;  %v1342_v31 = vmul.f32 0.0078125, %v4020_v29  ;;  %5306 = vst [vmem:[#allocation19_spill] sm:$0xff] %v4149_v21  ;;  %v1523_v7 = vmul.f32 %v4138_v39, %v4138_v39  ;;  %v5309_v29 = vld [vmem:[#allocation21_spill] sm:$0xff]  ;;  %v1299_v39 = vmul.f32 0.0078125, %v4070_v43 }
 0x1d2   : > { %v4126_v16 = vpop.xlane.xlu1 %1140  ;;  %v4128_v54 = vpop.xlane.xlu0 %1138 }
 0x1d3   : > { %v4152_v58 = vsub.f32 %v5307_v4, %v1295_v15  ;;  %v4159_v49 = vsub.f32 %v5309_v29, %v1342_v31  ;;  %v1297_v15 = vmul.f32 0.0078125, %v4032_v62  ;;  %v1480_v4 = vmul.f32 %v4149_v21, %v4149_v21  ;;  %v5313_v29 = vld [vmem:[#allocation23_spill] sm:$0xff] }
 0x1d4   : > { %v4183_v62 = vsub.f32 %v5313_v29, %v1298_v10  ;;  %v5319_v29 = vld [vmem:[#allocation26_spill] sm:$0xff] }
 0x1d5   : > { %1581 = vadd.xlane.f32.xlu1 %v1478_v35  ;;  %1579 = vadd.xlane.f32.xlu0 %v1477_v34  ;;  %5308 = vst [vmem:[#allocation20_spill] sm:$0xff] %v4152_v58  ;;  %5310 = vst [vmem:[#allocation21_spill] sm:$0xff] %v4159_v49  ;;  %v5311_v35 = vld [vmem:[#allocation22_spill] sm:$0xff] }
 0x1d6   : > { %v4144_v18 = vpop.xlane.xlu1 %1232  ;;  %v4146_v33 = vpop.xlane.xlu0 %1230  ;;  %v4162_v34 = vsub.f32 %v5311_v35, %v1341_v3  ;;  %5314 = vst [vmem:[#allocation23_spill] sm:$0xff] %v4183_v62  ;;  %v5315_v35 = vld [vmem:[#allocation24_spill] sm:$0xff] }
 0x1d7   : > { %v4186_v21 = vsub.f32 %v5315_v35, %v1297_v15 }
 0x1d8   : > { %5312 = vst [vmem:[#allocation22_spill] sm:$0xff] %v4162_v34  ;;  %v1525_v61 = vmul.f32 %v4162_v34, %v4162_v34  ;;  %v5317_v34 = vld [vmem:[#allocation25_spill] sm:$0xff] }
 0x1d9   : > { %1673 = vadd.xlane.f32.xlu1 %v1524_v45  ;;  %1671 = vadd.xlane.f32.xlu0 %v1523_v7  ;;  %v1479_v45 = vmul.f32 %v4152_v58, %v4152_v58  ;;  %v1526_v7 = vmul.f32 %v4159_v49, %v4159_v49  ;;  %5316 = vst [vmem:[#allocation24_spill] sm:$0xff] %v4186_v21  ;;  %v1344_v58 = vmul.f32 0.0078125, %v4048_v40 }
 0x1da   : > { %v4164_v20 = vpop.xlane.xlu1 %1144  ;;  %v4166_v23 = vpop.xlane.xlu0 %1142  ;;  %v1482_v40 = vmul.f32 %v4183_v62, %v4183_v62 }
 0x1db   : > { %v4197_v10 = vsub.f32 %v5317_v34, %v1344_v58  ;;  %v1346_v34 = vmul.f32 0.0078125, %v4078_v57 }
 0x1dd   : > { %1585 = vadd.xlane.f32.xlu1 %v1480_v4  ;;  %1583 = vadd.xlane.f32.xlu0 %v1479_v45  ;;  %v1343_v4 = vmul.f32 0.0078125, %v4050_v22  ;;  %v1300_v45 = vmul.f32 0.0078125, %v4068_v9  ;;  %5318 = vst [vmem:[#allocation25_spill] sm:$0xff] %v4197_v10  ;;  %v1481_v22 = vmul.f32 %v4186_v21, %v4186_v21  ;;  %v5321_v9 = vld [vmem:[#allocation27_spill] sm:$0xff]  ;;  %v1347_v21 = vmul.f32 0.0078125, %v4118_v32 }
 0x1de   : > { %v4174_v31 = vpop.xlane.xlu1 %1236  ;;  %v4176_v3 = vpop.xlane.xlu0 %1234 }
 0x1df   : > { %v4200_v15 = vsub.f32 %v5319_v29, %v1343_v4  ;;  %v4207_v43 = vsub.f32 %v5321_v9, %v1300_v45  ;;  %v1345_v4 = vmul.f32 0.0078125, %v4080_v36  ;;  %v1528_v29 = vmul.f32 %v4197_v10, %v4197_v10  ;;  %v5325_v9 = vld [vmem:[#allocation29_spill] sm:$0xff] }
 0x1e0   : > { %v4231_v36 = vsub.f32 %v5325_v9, %v1346_v34  ;;  %v5331_v9 = vld [vmem:[#allocation32_spill] sm:$0xff] }
 0x1e1   : > { %1677 = vadd.xlane.f32.xlu1 %v1526_v7  ;;  %1675 = vadd.xlane.f32.xlu0 %v1525_v61  ;;  %5320 = vst [vmem:[#allocation26_spill] sm:$0xff] %v4200_v15  ;;  %5322 = vst [vmem:[#allocation27_spill] sm:$0xff] %v4207_v43  ;;  %v5323_v7 = vld [vmem:[#allocation28_spill] sm:$0xff] }
 0x1e2   : > { %v4192_v49 = vpop.xlane.xlu1 %1148  ;;  %v4194_v53 = vpop.xlane.xlu0 %1146  ;;  %v4210_v61 = vsub.f32 %v5323_v7, %v1299_v39  ;;  %5326 = vst [vmem:[#allocation29_spill] sm:$0xff] %v4231_v36  ;;  %v5327_v7 = vld [vmem:[#allocation30_spill] sm:$0xff] }
 0x1e3   : > { %v4234_v10 = vsub.f32 %v5327_v7, %v1345_v4 }
 0x1e4   : > { %5324 = vst [vmem:[#allocation28_spill] sm:$0xff] %v4210_v61  ;;  %v1483_v57 = vmul.f32 %v4210_v61, %v4210_v61  ;;  %v5329_v61 = vld [vmem:[#allocation31_spill] sm:$0xff] }
 0x1e5   : > { %1589 = vadd.xlane.f32.xlu1 %v1482_v40  ;;  %1587 = vadd.xlane.f32.xlu0 %v1481_v22  ;;  %v1527_v40 = vmul.f32 %v4200_v15, %v4200_v15  ;;  %v1484_v22 = vmul.f32 %v4207_v43, %v4207_v43  ;;  %5328 = vst [vmem:[#allocation30_spill] sm:$0xff] %v4234_v10  ;;  %v1302_v15 = vmul.f32 0.0078125, %v4096_v44 }
 0x1e6   : > { %v4212_v35 = vpop.xlane.xlu1 %1240  ;;  %v4214_v58 = vpop.xlane.xlu0 %1238  ;;  %v1530_v44 = vmul.f32 %v4231_v36, %v4231_v36 }
 0x1e7   : > { %v4245_v34 = vsub.f32 %v5329_v61, %v1302_v15  ;;  %v1304_v61 = vmul.f32 0.0078125, %v4126_v16 }
 0x1e9   : > { %1681 = vadd.xlane.f32.xlu1 %v1528_v29  ;;  %1679 = vadd.xlane.f32.xlu0 %v1527_v40  ;;  %v1301_v29 = vmul.f32 0.0078125, %v4098_v26  ;;  %v1348_v40 = vmul.f32 0.0078125, %v4116_v24  ;;  %5330 = vst [vmem:[#allocation31_spill] sm:$0xff] %v4245_v34  ;;  %v1529_v26 = vmul.f32 %v4234_v10, %v4234_v10  ;;  %v5333_v24 = vld [vmem:[#allocation33_spill] sm:$0xff]  ;;  %v1305_v10 = vmul.f32 0.0078125, %v4166_v23 }
 0x1ea   : > { %v4222_v45 = vpop.xlane.xlu1 %1152  ;;  %v4224_v39 = vpop.xlane.xlu0 %1150 }
 0x1eb   : > { %v4248_v4 = vsub.f32 %v5331_v9, %v1301_v29  ;;  %v4255_v32 = vsub.f32 %v5333_v24, %v1348_v40  ;;  %v1303_v29 = vmul.f32 0.0078125, %v4128_v54  ;;  %v1486_v9 = vmul.f32 %v4245_v34, %v4245_v34  ;;  %v5337_v24 = vld [vmem:[#allocation35_spill] sm:$0xff] }
 0x1ec   : > { %v4279_v54 = vsub.f32 %v5337_v24, %v1304_v61  ;;  %v5340_v24 = vld [vmem:[#allocation38_spill] sm:$0xff]  ;;  %v4306_v23 = vsub.f32 %v3699_v42, %v1305_v10 }
 0x1ed   : > { %1593 = vadd.xlane.f32.xlu1 %v1484_v22  ;;  %1591 = vadd.xlane.f32.xlu0 %v1483_v57  ;;  %5332 = vst [vmem:[#allocation32_spill] sm:$0xff] %v4248_v4  ;;  %5334 = vst [vmem:[#allocation33_spill] sm:$0xff] %v4255_v32  ;;  %v5335_v22 = vld [vmem:[#allocation34_spill] sm:$0xff] }
 0x1ee   : > { %v4240_v43 = vpop.xlane.xlu1 %1244  ;;  %v4242_v62 = vpop.xlane.xlu0 %1242  ;;  %v4258_v57 = vsub.f32 %v5335_v22, %v1347_v21  ;;  %v5338_v22 = vld [vmem:[#allocation36_spill] sm:$0xff]  ;;  %5341 = vst [vmem:[#allocation35_spill] sm:$0xff] %v4306_v23 }
 0x1ef   : > { %v4282_v34 = vsub.f32 %v5338_v22, %v1303_v29 }
 0x1f0   : > { %5336 = vst [vmem:[#allocation34_spill] sm:$0xff] %v4258_v57  ;;  %v1531_v16 = vmul.f32 %v4258_v57, %v4258_v57  ;;  %v5339_v57 = vld [vmem:[#allocation37_spill] sm:$0xff] }
 0x1f1   : > { %1685 = vadd.xlane.f32.xlu1 %v1530_v44  ;;  %1683 = vadd.xlane.f32.xlu0 %v1529_v26  ;;  %v1485_v44 = vmul.f32 %v4248_v4, %v4248_v4  ;;  %v1532_v26 = vmul.f32 %v4255_v32, %v4255_v32  ;;  %v1350_v4 = vmul.f32 0.0078125, %v4144_v18  ;;  %v1488_v18 = vmul.f32 %v4279_v54, %v4279_v54 }
 0x1f2   : > { %v4260_v7 = vpop.xlane.xlu1 %1156  ;;  %v4262_v15 = vpop.xlane.xlu0 %1154 }
 0x1f3   : > { %v4293_v61 = vsub.f32 %v5339_v57, %v1350_v4  ;;  %v1352_v57 = vmul.f32 0.0078125, %v4174_v31  ;;  %v1489_v31 = vmul.f32 %v4306_v23, %v4306_v23 }
 0x1f5   : > { %1597 = vadd.xlane.f32.xlu1 %v1486_v9  ;;  %1595 = vadd.xlane.f32.xlu0 %v1485_v44  ;;  %v1349_v9 = vmul.f32 0.0078125, %v4146_v33  ;;  %v1306_v44 = vmul.f32 0.0078125, %v4164_v20  ;;  %v1487_v33 = vmul.f32 %v4282_v34, %v4282_v34  ;;  %v1534_v22 = vmul.f32 %v4293_v61, %v4293_v61 }
 0x1f6   : > { %v4270_v40 = vpop.xlane.xlu1 %1248  ;;  %v4272_v21 = vpop.xlane.xlu0 %1246 }
 0x1f7   : > { %v4296_v29 = vsub.f32 %v5340_v24, %v1349_v9  ;;  %v4303_v20 = vsub.f32 %v3695_v38, %v1306_v44  ;;  %v1308_v24 = vmul.f32 0.0078125, %v4192_v49 }
 0x1f9   : > { %1689 = vadd.xlane.f32.xlu1 %v1532_v26  ;;  %1687 = vadd.xlane.f32.xlu0 %v1531_v16  ;;  %v1351_v16 = vmul.f32 0.0078125, %v4176_v3  ;;  %v1533_v9 = vmul.f32 %v4296_v29, %v4296_v29  ;;  %v1490_v10 = vmul.f32 %v4303_v20, %v4303_v20  ;;  %v4327_v3 = vsub.f32 %v3713_v47, %v1352_v57 }
 0x1fa   : > { %v4288_v32 = vpop.xlane.xlu1 %1160  ;;  %v4290_v36 = vpop.xlane.xlu0 %1158  ;;  %v4341_v47 = vsub.f32 %v3723_v41, %v1308_v24 }
 0x1fb   : > { %v4330_v44 = vsub.f32 %v3717_v50, %v1351_v16  ;;  %v1309_v16 = vmul.f32 0.0078125, %v4224_v39 }
 0x1fd   : > { %1601 = vadd.xlane.f32.xlu1 %v1488_v18  ;;  %1599 = vadd.xlane.f32.xlu0 %v1487_v33  ;;  %v1307_v18 = vmul.f32 0.0078125, %v4194_v53  ;;  %v1354_v33 = vmul.f32 0.0078125, %v4212_v35  ;;  %v1536_v53 = vmul.f32 %v4327_v3, %v4327_v3  ;;  %v1535_v49 = vmul.f32 %v4330_v44, %v4330_v44 }
 0x1fe   : > { %v4308_v26 = vpop.xlane.xlu1 %1252  ;;  %v4310_v4 = vpop.xlane.xlu0 %1250 }
 0x1ff   : > { %v4344_v50 = vsub.f32 %v3727_v37, %v1307_v18  ;;  %v4351_v35 = vsub.f32 %v3733_v48, %v1354_v33  ;;  %v1310_v37 = vmul.f32 0.0078125, %v4222_v45  ;;  %v4379_v18 = vsub.f32 %v3747_v59, %v1309_v16 }
 0x200   : > { %v1356_v33 = vmul.f32 0.0078125, %v4240_v43  ;;  %v1357_v16 = vmul.f32 0.0078125, %v4272_v21 }
 0x201   : > { %1693 = vadd.xlane.f32.xlu1 %v1534_v22  ;;  %1691 = vadd.xlane.f32.xlu0 %v1533_v9  ;;  %v1353_v22 = vmul.f32 0.0078125, %v4214_v58  ;;  %v1538_v24 = vmul.f32 %v4351_v35, %v4351_v35  ;;  %v4376_v39 = vsub.f32 %v3743_v55, %v1310_v37 }
 0x202   : > { %v4318_v38 = vpop.xlane.xlu1 %1164  ;;  %v4320_v42 = vpop.xlane.xlu0 %1162  ;;  %v4390_v55 = vsub.f32 %v3753_v56, %v1356_v33 }
 0x203   : > { %v4354_v58 = vsub.f32 %v3737_v51, %v1353_v22  ;;  %v1355_v22 = vmul.f32 0.0078125, %v4242_v62  ;;  %v1494_v43 = vmul.f32 %v4376_v39, %v4376_v39  ;;  %v1493_v62 = vmul.f32 %v4379_v18, %v4379_v18 }
 0x205   : > { %1605 = vadd.xlane.f32.xlu1 %v1490_v10  ;;  %1603 = vadd.xlane.f32.xlu0 %v1489_v31  ;;  %v1492_v10 = vmul.f32 %v4341_v47, %v4341_v47  ;;  %v1491_v31 = vmul.f32 %v4344_v50, %v4344_v50  ;;  %v1537_v45 = vmul.f32 %v4354_v58, %v4354_v58 }
 0x206   : > { %v4336_v9 = vpop.xlane.xlu1 %1256  ;;  %v4338_v23 = vpop.xlane.xlu0 %1254  ;;  %v4393_v59 = vsub.f32 %v3757_v60, %v1355_v22  ;;  %v1358_v60 = vmul.f32 0.0078125, %v4270_v40  ;;  %v4427_v22 = vsub.f32 %v3777_v6, %v1357_v16  ;;  %v1315_v16 = vmul.f32 0.0078125, %v4320_v42 }
 0x208   : > { %v4424_v21 = vsub.f32 %v3773_v2, %v1358_v60 }
 0x209   : > { %1697 = vadd.xlane.f32.xlu1 %v1536_v53  ;;  %1695 = vadd.xlane.f32.xlu0 %v1535_v49  ;;  %v1312_v53 = vmul.f32 0.0078125, %v4260_v7  ;;  %v1311_v49 = vmul.f32 0.0078125, %v4262_v15 }
 0x20a   : > { %v4356_v57 = vpop.xlane.xlu1 %1168  ;;  %v4358_v41 = vpop.xlane.xlu0 %1166 }
 0x20b   : > { %v4400_v7 = vsub.f32 %v3763_v1, %v1312_v53  ;;  %v4403_v15 = vsub.f32 %v3767_v5, %v1311_v49  ;;  %v1314_v53 = vmul.f32 0.0078125, %v4288_v32  ;;  %v1313_v49 = vmul.f32 0.0078125, %v4290_v36 }
 0x20c   : > { %v1542_v32 = vmul.f32 %v4424_v21, %v4424_v21  ;;  %v1541_v36 = vmul.f32 %v4427_v22, %v4427_v22 }
 0x20d   : > { %1609 = vadd.xlane.f32.xlu1 %v1492_v10  ;;  %1607 = vadd.xlane.f32.xlu0 %v1491_v31  ;;  %v1496_v33 = vmul.f32 %v4400_v7, %v4400_v7  ;;  %v1495_v40 = vmul.f32 %v4403_v15, %v4403_v15  ;;  %v4438_v2 = vsub.f32 %v3783_v11, %v1314_v53 }
 0x20e   : > { %v4367_v48 = vpop.xlane.xlu1 %1260  ;;  %v4369_v51 = vpop.xlane.xlu0 %1258  ;;  %v4441_v6 = vsub.f32 %v3787_v13, %v1313_v49  ;;  %v1316_v13 = vmul.f32 0.0078125, %v4318_v38  ;;  %v4475_v49 = vsub.f32 %v3807_v19, %v1315_v16  ;;  %v5352_v16 = vld [vmem:[#allocation42_spill] sm:$0xff] }
 0x210   : > { %v4472_v42 = vsub.f32 %v3803_v63, %v1316_v13  ;;  %5345 = vst [vmem:[#allocation67_spill] sm:$0xff] %v4475_v49  ;;  %v5348_v13 = vld [vmem:[#allocation40_spill] sm:$0xff] }
 0x211   : > { %1701 = vadd.xlane.f32.xlu1 %v1538_v24  ;;  %1699 = vadd.xlane.f32.xlu0 %v1537_v45  ;;  %v1540_v24 = vmul.f32 %v4390_v55, %v4390_v55  ;;  %v1539_v45 = vmul.f32 %v4393_v59, %v4393_v59 }
 0x212   : > { %v4385_v10 = vpop.xlane.xlu1 %1172  ;;  %v4387_v31 = vpop.xlane.xlu0 %1170  ;;  %5344 = vst [vmem:[#allocation38_spill] sm:$0xff] %v4472_v42 }
 0x215   : > { %1613 = vadd.xlane.f32.xlu1 %v1494_v43  ;;  %1611 = vadd.xlane.f32.xlu0 %v1493_v62  ;;  %v1360_v43 = vmul.f32 0.0078125, %v4308_v26  ;;  %v1359_v62 = vmul.f32 0.0078125, %v4310_v4 }
 0x216   : > { %v4405_v37 = vpop.xlane.xlu1 %1264  ;;  %v4407_v56 = vpop.xlane.xlu0 %1262 }
 0x217   : > { %v4448_v26 = vsub.f32 %v3793_v12, %v1360_v43  ;;  %v4451_v4 = vsub.f32 %v3797_v14, %v1359_v62  ;;  %v1362_v43 = vmul.f32 0.0078125, %v4336_v9  ;;  %v1361_v62 = vmul.f32 0.0078125, %v4338_v23 }
 0x218   : > { %v1500_v9 = vmul.f32 %v4472_v42, %v4472_v42  ;;  %v1499_v23 = vmul.f32 %v4475_v49, %v4475_v49  ;;  %v1365_v49 = vmul.f32 0.0078125, %v4407_v56  ;;  %v5364_v56 = vld [vmem:[#allocation48_spill] sm:$0xff] }
 0x219   : > { %1705 = vadd.xlane.f32.xlu1 %v1540_v24  ;;  %1703 = vadd.xlane.f32.xlu0 %v1539_v45  ;;  %5342 = vst [vmem:[#allocation36_spill] sm:$0xff] %v4448_v26  ;;  %5343 = vst [vmem:[#allocation37_spill] sm:$0xff] %v4451_v4  ;;  %v1544_v53 = vmul.f32 %v4448_v26, %v4448_v26  ;;  %v1543_v38 = vmul.f32 %v4451_v4, %v4451_v4  ;;  %v5346_v4 = vld [vmem:[#allocation39_spill] sm:$0xff] }
 0x21a   : > { %v4415_v1 = vpop.xlane.xlu1 %1176  ;;  %v4417_v5 = vpop.xlane.xlu0 %1174  ;;  %v4486_v63 = vsub.f32 %v5346_v4, %v1362_v43  ;;  %v4489_v19 = vsub.f32 %v5348_v13, %v1361_v62  ;;  %v1364_v43 = vmul.f32 0.0078125, %v4367_v48  ;;  %v1363_v62 = vmul.f32 0.0078125, %v4369_v51 }
 0x21c   : > { %5347 = vst [vmem:[#allocation39_spill] sm:$0xff] %v4486_v63  ;;  %5349 = vst [vmem:[#allocation40_spill] sm:$0xff] %v4489_v19  ;;  %v1546_v13 = vmul.f32 %v4486_v63, %v4486_v63 }
 0x21d   : > { %1617 = vadd.xlane.f32.xlu1 %v1496_v33  ;;  %1615 = vadd.xlane.f32.xlu0 %v1495_v40  ;;  %v1498_v33 = vmul.f32 %v4438_v2, %v4438_v2  ;;  %v1497_v40 = vmul.f32 %v4441_v6, %v4441_v6 }
 0x21e   : > { %v4433_v24 = vpop.xlane.xlu1 %1268  ;;  %v4435_v45 = vpop.xlane.xlu0 %1266 }
 0x221   : > { %1709 = vadd.xlane.f32.xlu1 %v1542_v32  ;;  %1707 = vadd.xlane.f32.xlu0 %v1541_v36  ;;  %v1318_v32 = vmul.f32 0.0078125, %v4356_v57  ;;  %v1317_v36 = vmul.f32 0.0078125, %v4358_v41  ;;  %v5350_v57 = vld [vmem:[#allocation41_spill] sm:$0xff] }
 0x222   : > { %v4453_v60 = vpop.xlane.xlu1 %1180  ;;  %v4455_v11 = vpop.xlane.xlu0 %1178 }
 0x223   : > { %v4496_v41 = vsub.f32 %v5350_v57, %v1318_v32  ;;  %v5354_v57 = vld [vmem:[#allocation43_spill] sm:$0xff] }
 0x224   : > { %v4520_v51 = vsub.f32 %v5354_v57, %v1364_v43  ;;  %v5360_v57 = vld [vmem:[#allocation46_spill] sm:$0xff] }
 0x225   : > { %1621 = vadd.xlane.f32.xlu1 %v1498_v33  ;;  %1619 = vadd.xlane.f32.xlu0 %v1497_v40  ;;  %5351 = vst [vmem:[#allocation41_spill] sm:$0xff] %v4496_v41 }
 0x226   : > { %v4463_v12 = vpop.xlane.xlu1 %1272  ;;  %v4465_v14 = vpop.xlane.xlu0 %1270  ;;  %5355 = vst [vmem:[#allocation43_spill] sm:$0xff] %v4520_v51 }
 0x229   : > { %1713 = vadd.xlane.f32.xlu1 %v1544_v53  ;;  %1711 = vadd.xlane.f32.xlu0 %v1543_v38  ;;  %v4499_v53 = vsub.f32 %v5352_v16, %v1317_v36  ;;  %v5356_v16 = vld [vmem:[#allocation44_spill] sm:$0xff] }
 0x22a   : > { %v4481_v33 = vpop.xlane.xlu1 %1184  ;;  %v4483_v40 = vpop.xlane.xlu0 %1182  ;;  %v4523_v63 = vsub.f32 %v5356_v16, %v1363_v62 }
 0x22b   : > { %5353 = vst [vmem:[#allocation42_spill] sm:$0xff] %v4499_v53  ;;  %v1501_v48 = vmul.f32 %v4499_v53, %v4499_v53  ;;  %v5358_v53 = vld [vmem:[#allocation45_spill] sm:$0xff] }
 0x22c   : > { %5357 = vst [vmem:[#allocation44_spill] sm:$0xff] %v4523_v63 }
 0x22d   : > { %1625 = vadd.xlane.f32.xlu1 %v1500_v9  ;;  %1623 = vadd.xlane.f32.xlu0 %v1499_v23  ;;  %v1545_v9 = vmul.f32 %v4489_v19, %v4489_v19  ;;  %v1502_v23 = vmul.f32 %v4496_v41, %v4496_v41  ;;  %v1320_v19 = vmul.f32 0.0078125, %v4385_v10  ;;  %v1548_v10 = vmul.f32 %v4520_v51, %v4520_v51 }
 0x22e   : > { %v4501_v38 = vpop.xlane.xlu1 %1276  ;;  %v4503_v4 = vpop.xlane.xlu0 %1274 }
 0x22f   : > { %v4534_v43 = vsub.f32 %v5358_v53, %v1320_v19  ;;  %v1322_v19 = vmul.f32 0.0078125, %v4415_v1  ;;  %v1321_v53 = vmul.f32 0.0078125, %v4417_v5  ;;  %v5366_v1 = vld [vmem:[#allocation49_spill] sm:$0xff]  ;;  %v5367_v5 = vld [vmem:[#allocation50_spill] sm:$0xff] }
 0x231   : > { %1717 = vadd.xlane.f32.xlu1 %v1546_v13  ;;  %1715 = vadd.xlane.f32.xlu0 %v1545_v9  ;;  %v1319_v13 = vmul.f32 0.0078125, %v4387_v31  ;;  %v1366_v9 = vmul.f32 0.0078125, %v4405_v37  ;;  %5359 = vst [vmem:[#allocation45_spill] sm:$0xff] %v4534_v43  ;;  %v1547_v31 = vmul.f32 %v4523_v63, %v4523_v63  ;;  %v5362_v37 = vld [vmem:[#allocation47_spill] sm:$0xff]  ;;  %v1504_v51 = vmul.f32 %v4534_v43, %v4534_v43 }
 0x232   : > { %v4511_v32 = vpop.xlane.xlu1 %1188  ;;  %v4513_v36 = vpop.xlane.xlu0 %1186  ;;  %v5370_v63 = vld [vmem:[#allocation51_spill] sm:$0xff] }
 0x233   : > { %v4537_v62 = vsub.f32 %v5360_v57, %v1319_v13 }
 0x235   : > { %1629 = vadd.xlane.f32.xlu1 %v1502_v23  ;;  %1627 = vadd.xlane.f32.xlu0 %v1501_v48  ;;  %5361 = vst [vmem:[#allocation46_spill] sm:$0xff] %v4537_v62  ;;  %v4544_v23 = vsub.f32 %v5362_v37, %v1366_v9  ;;  %v4547_v48 = vsub.f32 %v5364_v56, %v1365_v49 }
 0x236   : > { %v4529_v41 = vpop.xlane.xlu1 %1280  ;;  %v4531_v42 = vpop.xlane.xlu0 %1278  ;;  %v1503_v9 = vmul.f32 %v4537_v62, %v4537_v62  ;;  %v4561_v56 = vsub.f32 %v5367_v5, %v1321_v53  ;;  %v1323_v53 = vmul.f32 0.0078125, %v4455_v11  ;;  %v5371_v11 = vld [vmem:[#allocation52_spill] sm:$0xff] }
 0x237   : > { %5363 = vst [vmem:[#allocation47_spill] sm:$0xff] %v4544_v23  ;;  %5365 = vst [vmem:[#allocation48_spill] sm:$0xff] %v4547_v48  ;;  %v1550_v49 = vmul.f32 %v4544_v23, %v4544_v23  ;;  %v1549_v62 = vmul.f32 %v4547_v48, %v4547_v48  ;;  %v5369_v23 = vld [vmem:[#allocation5_spill] sm:$0xff] }
 0x238   : > { %5368 = vst [vmem:[#allocation49_spill] sm:$0xff] %v4561_v56 }
 0x239   : > { %1721 = vadd.xlane.f32.xlu1 %v1548_v10  ;;  %1719 = vadd.xlane.f32.xlu0 %v1547_v31  ;;  %v4558_v31 = vsub.f32 %v5366_v1, %v1322_v19  ;;  %v2113_v19 = vsub.s32 1, %v5369_v23  ;;  %v2209_v1 = vsub.s32 2, %v5369_v23 }
 0x23a   : > { %v1562_v16 = vpop.xlane.xlu1 %1561  ;;  %v1560_v13 = vpop.xlane.xlu0 %1559 }
 0x23b   : > { %v1744_v57 = vmul.f32 0.0078125, %v1562_v16  ;;  %v1743_v26 = vmul.f32 0.0078125, %v1560_v13  ;;  %v1368_v16 = vmul.f32 0.0078125, %v4433_v24 }
 0x23d   : > { %v1836_v37 = vadd.f32 1e-05, %v1744_v57  ;;  %v1835_v10 = vadd.f32 1e-05, %v1743_v26  ;;  %1633 = vadd.xlane.f32.xlu1 %v1504_v51  ;;  %1631 = vadd.xlane.f32.xlu0 %v1503_v9  ;;  %v1367_v26 = vmul.f32 0.0078125, %v4435_v45  ;;  %v1324_v9 = vmul.f32 0.0078125, %v4453_v60 }
 0x23e   : > { %v1654_v13 = vpop.xlane.xlu1 %1653  ;;  %v1652_v43 = vpop.xlane.xlu0 %1651  ;;  %v4572_v48 = vsub.f32 %v5370_v63, %v1368_v16  ;;  %v1370_v45 = vmul.f32 0.0078125, %v4463_v12  ;;  %v1506_v60 = vmul.f32 %v4558_v31, %v4558_v31  ;;  %v1369_v63 = vmul.f32 0.0078125, %v4465_v14  ;;  %v5373_v16 = vld [vmem:[#allocation54_spill] sm:$0xff] }
 0x23f   : > { %2870 = vrsqrt.f32 %v1836_v37  ;;  %v1790_v51 = vmul.f32 0.0078125, %v1654_v13  ;;  %v1789_v57 = vmul.f32 0.0078125, %v1652_v43  ;;  %v4580_v13 = vsub.f32 %v5371_v11, %v1367_v26 }
 0x240   : > { %2872 = vrsqrt.f32 %v1835_v10  ;;  %v1505_v10 = vmul.f32 %v4561_v56, %v4561_v56  ;;  %v1326_v12 = vmul.f32 0.0078125, %v4481_v33  ;;  %v3054_v56 = vld [vmem:[%s5102_s2] sm:$0x7]  ;;  %v1325_v14 = vmul.f32 0.0078125, %v4483_v40 }
 0x241   : > { %v1882_v24 = vadd.f32 1e-05, %v1790_v51  ;;  %v1881_v5 = vadd.f32 1e-05, %v1789_v57  ;;  %1725 = vadd.xlane.f32.xlu1 %v1550_v49  ;;  %1723 = vadd.xlane.f32.xlu0 %v1549_v62  ;;  %v5372_v62 = vld [vmem:[#allocation53_spill] sm:$0xff]  ;;  %v4588_v57 = vsub.f32 %v5373_v16, %v1323_v53  ;;  %v4593_v26 = vrot.slane %v3054_v56, %v2113_v19 }
 0x242   : > { %v1566_v37 = vpop.xlane.xlu1 %1565  ;;  %v1564_v43 = vpop.xlane.xlu0 %1563  ;;  %v4583_v51 = vsub.f32 %v5372_v62, %v1324_v9  ;;  %v5375_v9 = vld [vmem:[#allocation55_spill] sm:$0xff]  ;;  %v4599_v33 = vrot.slane %v3054_v56, %v2209_v1  ;;  %v1552_v11 = vmul.f32 %v4572_v48, %v4572_v48  ;;  %v1372_v1 = vmul.f32 0.0078125, %v4501_v38 }
 0x243   : > { %2874 = vrsqrt.f32 %v1882_v24  ;;  %v1746_v23 = vmul.f32 0.0078125, %v1566_v37  ;;  %v1745_v49 = vmul.f32 0.0078125, %v1564_v43  ;;  %5374 = vst [vmem:[#allocation50_spill] sm:$0xff] %v4588_v57  ;;  %v4596_v43 = vsub.f32 %v5375_v9, %v1370_v45  ;;  %v5378_v45 = vld [vmem:[#allocation57_spill] sm:$0xff] }
 0x244   : > { %2876 = vrsqrt.f32 %v1881_v5  ;;  %v1508_v40 = vmul.f32 %v4583_v51, %v4583_v51 }
 0x245   : > { %v1838_v24 = vadd.f32 1e-05, %v1746_v23  ;;  %v1837_v37 = vadd.f32 1e-05, %v1745_v49  ;;  %1637 = vadd.xlane.f32.xlu1 %v1506_v60  ;;  %1635 = vadd.xlane.f32.xlu0 %v1505_v10  ;;  %5376 = vst [vmem:[#allocation5_spill] sm:$0xff] %v4596_v43  ;;  %v1551_v60 = vmul.f32 %v4580_v13, %v4580_v13  ;;  %v5377_v10 = vld [vmem:[#allocation56_spill] sm:$0xff]  ;;  %v4609_v49 = vsub.f32 %v5378_v45, %v1326_v12 }
 0x246   : > { %v1658_v53 = vpop.xlane.xlu1 %1657  ;;  %v1656_v5 = vpop.xlane.xlu0 %1655  ;;  %v4606_v23 = vsub.f32 %v5377_v10, %v1369_v63  ;;  %v1507_v63 = vmul.f32 %v4588_v57, %v4588_v57  ;;  %v5380_v12 = vld [vmem:[#allocation58_spill] sm:$0xff]  ;;  %v1554_v45 = vmul.f32 %v4596_v43, %v4596_v43 }
 0x247   : > { %2878 = vrsqrt.f32 %v1838_v24  ;;  %v1792_v19 = vmul.f32 0.0078125, %v1658_v53  ;;  %v1791_v62 = vmul.f32 0.0078125, %v1656_v5  ;;  %5379 = vst [vmem:[#allocation51_spill] sm:$0xff] %v4609_v49  ;;  %v4621_v53 = vsub.f32 %v5380_v12, %v1325_v14 }
 0x248   : > { %2880 = vrsqrt.f32 %v1837_v37  ;;  %v1371_v37 = vmul.f32 0.0078125, %v4503_v4  ;;  %v1553_v14 = vmul.f32 %v4606_v23, %v4606_v23  ;;  %v1510_v4 = vmul.f32 %v4609_v49, %v4609_v49 }
 0x249   : > { %v2871_v56 = vpop.eup %2870  ;;  %v1884_v16 = vadd.f32 1e-05, %v1792_v19  ;;  %v1883_v24 = vadd.f32 1e-05, %v1791_v62  ;;  %1729 = vadd.xlane.f32.xlu1 %v1552_v11  ;;  %1727 = vadd.xlane.f32.xlu0 %v1551_v60 }
 0x24a   : > { %v2873_v9 = vpop.eup %2872  ;;  %v2020_v5 = vmul.f32 %v2871_v56, %v3964_v0  ;;  %v1570_v10 = vpop.xlane.xlu1 %1569  ;;  %v5381_v56 = vld [vmem:[#allocation59_spill] sm:$0xff] }
 0x24b   : > { %v1568_v38 = vpop.xlane.xlu0 %1567  ;;  %v2019_v19 = vmul.f32 %v2873_v9, %v3967_v30  ;;  %2882 = vrsqrt.f32 %v1884_v16  ;;  %v1748_v11 = vmul.f32 0.0078125, %v1570_v10  ;;  %v4634_v12 = vsub.f32 %v5381_v56, %v1372_v1  ;;  %v5382_v9 = vld [vmem:[#allocation60_spill] sm:$0xff] }
 0x24c   : > { %v1747_v62 = vmul.f32 0.0078125, %v1568_v38  ;;  %v2116_v60 = vmul.f32 %v4593_v26, %v2020_v5  ;;  %2884 = vrsqrt.f32 %v1883_v24  ;;  %v4638_v24 = vsub.f32 %v5382_v9, %v1371_v37 }
 0x24d   : > { %v2875_v0 = vpop.eup %2874  ;;  %v2115_v43 = vmul.f32 %v4593_v26, %v2019_v19  ;;  %v1840_v57 = vadd.f32 1e-05, %v1748_v11  ;;  %1641 = vadd.xlane.f32.xlu1 %v1508_v40  ;;  %1639 = vadd.xlane.f32.xlu0 %v1507_v63  ;;  %v1509_v1 = vmul.f32 %v4621_v53, %v4621_v53  ;;  %v1328_v63 = vmul.f32 0.0078125, %v4511_v32 }
 0x24e   : > { %v1839_v30 = vadd.f32 1e-05, %v1747_v62  ;;  %v2877_v16 = vpop.eup %2876  ;;  %v2212_v5 = vadd.f32 %v4599_v33, %v2116_v60  ;;  %v2066_v10 = vmul.f32 %v2875_v0, %v3976_v17  ;;  %v1662_v38 = vpop.xlane.xlu1 %1661  ;;  %v1327_v60 = vmul.f32 0.0078125, %v4513_v36 }
 0x24f   : > { %v1660_v49 = vpop.xlane.xlu0 %1659  ;;  %v2211_v19 = vadd.f32 %v4599_v33, %v2115_v43  ;;  %v2065_v11 = vmul.f32 %v2877_v16, %v3983_v25  ;;  %2886 = vrsqrt.f32 %v1840_v57  ;;  %v1794_v40 = vmul.f32 0.0078125, %v1662_v38 }
 0x250   : > { %2304 = vst [vmem:[%s4648_s24 + $0x8] sm:$0xff] %v2212_v5  ;;  %v2162_v17 = vmul.f32 %v4593_v26, %v2066_v10  ;;  %2888 = vrsqrt.f32 %v1839_v30  ;;  %v1793_v37 = vmul.f32 0.0078125, %v1660_v49  ;;  %v1556_v32 = vmul.f32 %v4634_v12, %v4634_v12 }
 0x251   : > { %v2879_v62 = vpop.eup %2878  ;;  %2303 = vst [vmem:[%s4648_s24] sm:$0xff] %v2211_v19  ;;  %v2161_v43 = vmul.f32 %v4593_v26, %v2065_v11  ;;  %v1886_v25 = vadd.f32 1e-05, %v1794_v40  ;;  %1733 = vadd.xlane.f32.xlu1 %v1554_v45  ;;  %1731 = vadd.xlane.f32.xlu0 %v1553_v14  ;;  %v1555_v36 = vmul.f32 %v4638_v24, %v4638_v24  ;;  %v5383_v19 = vld [vmem:[#allocation61_spill] sm:$0xff]  ;;  %v1374_v40 = vmul.f32 0.0078125, %v4529_v41 }
 0x252   : > { %v2881_v57 = vpop.eup %2880  ;;  %v2258_v0 = vadd.f32 %v4599_v33, %v2162_v17  ;;  %v2022_v56 = vmul.f32 %v2879_v62, %v3992_v27  ;;  %v1885_v30 = vadd.f32 1e-05, %v1793_v37  ;;  %v1574_v49 = vpop.xlane.xlu1 %1573  ;;  %v4664_v5 = vsub.f32 %v3937_v8, %v1328_v63 }
 0x253   : > { %v1572_v16 = vpop.xlane.xlu0 %1571  ;;  %v2257_v9 = vadd.f32 %v4599_v33, %v2161_v43  ;;  %v2021_v45 = vmul.f32 %v2881_v57, %v3998_v52  ;;  %2890 = vrsqrt.f32 %v1886_v25  ;;  %v1750_v14 = vmul.f32 0.0078125, %v1574_v49 }
 0x254   : > { %2350 = vst [vmem:[%s4648_s24 + $0x178] sm:$0xff] %v2258_v0  ;;  %v2118_v10 = vmul.f32 %v4593_v26, %v2022_v56  ;;  %2892 = vrsqrt.f32 %v1885_v30  ;;  %v1749_v27 = vmul.f32 0.0078125, %v1572_v16  ;;  %v4669_v11 = vsub.f32 %v5383_v19, %v1327_v60  ;;  %v5384_v30 = vld [vmem:[#allocation62_spill] sm:$0xff] }
 0x255   : > { %v2883_v38 = vpop.eup %2882  ;;  %2349 = vst [vmem:[%s4648_s24 + $0x170] sm:$0xff] %v2257_v9  ;;  %v2117_v52 = vmul.f32 %v4593_v26, %v2021_v45  ;;  %v1842_v17 = vadd.f32 1e-05, %v1750_v14  ;;  %1645 = vadd.xlane.f32.xlu1 %v1510_v4  ;;  %1643 = vadd.xlane.f32.xlu0 %v1509_v1  ;;  %v1373_v63 = vmul.f32 0.0078125, %v4531_v42  ;;  %v1512_v42 = vmul.f32 %v4664_v5, %v4664_v5  ;;  %v5385_v45 = vld [vmem:[#allocation63_spill] sm:$0xff] }
 0x256   : > { %v2885_v8 = vpop.eup %2884  ;;  %v2214_v37 = vadd.f32 %v4599_v33, %v2118_v10  ;;  %v2068_v62 = vmul.f32 %v2883_v38, %v4005_v46  ;;  %v1841_v43 = vadd.f32 1e-05, %v1749_v27  ;;  %v1666_v60 = vpop.xlane.xlu1 %1665  ;;  %v4684_v46 = vsub.f32 %v5384_v30, %v1374_v40  ;;  %v5386_v27 = vld [vmem:[#allocation64_spill] sm:$0xff] }
 0x257   : > { %v1664_v25 = vpop.xlane.xlu0 %1663  ;;  %v2213_v41 = vadd.f32 %v4599_v33, %v2117_v52  ;;  %v2067_v57 = vmul.f32 %v2885_v8, %v4008_v28  ;;  %2894 = vrsqrt.f32 %v1842_v17  ;;  %v1796_v0 = vmul.f32 0.0078125, %v1666_v60  ;;  %v5387_v8 = vld [vmem:[#allocation65_spill] sm:$0xff] }
 0x258   : > { %2306 = vst [vmem:[%s4648_s24 + $0x18] sm:$0xff] %v2214_v37  ;;  %v2164_v4 = vmul.f32 %v4593_v26, %v2068_v62  ;;  %2896 = vrsqrt.f32 %v1841_v43  ;;  %v1795_v1 = vmul.f32 0.0078125, %v1664_v25  ;;  %v1511_v28 = vmul.f32 %v4669_v11, %v4669_v11 }
 0x259   : > { %v2887_v56 = vpop.eup %2886  ;;  %2305 = vst [vmem:[%s4648_s24 + $0x10] sm:$0xff] %v2213_v41  ;;  %v2163_v49 = vmul.f32 %v4593_v26, %v2067_v57  ;;  %v1888_v16 = vadd.f32 1e-05, %v1796_v0  ;;  %1737 = vadd.xlane.f32.xlu1 %v1556_v32  ;;  %1735 = vadd.xlane.f32.xlu0 %v1555_v36  ;;  %v4691_v14 = vsub.f32 %v5385_v45, %v1373_v63  ;;  %v5388_v0 = vld [vmem:[#allocation66_spill] sm:$0xff] }
 0x25a   : > { %v2889_v9 = vpop.eup %2888  ;;  %v2260_v10 = vadd.f32 %v4599_v33, %v2164_v4  ;;  %v2024_v38 = vmul.f32 %v2887_v56, %v5386_v27  ;;  %v1887_v19 = vadd.f32 1e-05, %v1795_v1  ;;  %v1578_v40 = vpop.xlane.xlu1 %1577  ;;  %v1558_v25 = vmul.f32 %v4684_v46, %v4684_v46 }
 0x25b   : > { %v1576_v52 = vpop.xlane.xlu0 %1575  ;;  %v2259_v17 = vadd.f32 %v4599_v33, %v2163_v49  ;;  %v2023_v32 = vmul.f32 %v2889_v9, %v5387_v8  ;;  %2898 = vrsqrt.f32 %v1888_v16  ;;  %v1752_v36 = vmul.f32 0.0078125, %v1578_v40  ;;  %v5389_v9 = vld [vmem:[#allocation6_spill] sm:$0xff] }
 0x25c   : > { %2352 = vst [vmem:[%s4648_s24 + $0x188] sm:$0xff] %v2260_v10  ;;  %v2120_v37 = vmul.f32 %v4593_v26, %v2024_v38  ;;  %2900 = vrsqrt.f32 %v1887_v19  ;;  %v1751_v62 = vmul.f32 0.0078125, %v1576_v52  ;;  %v1557_v49 = vmul.f32 %v4691_v14, %v4691_v14 }
 0x25d   : > { %v2891_v63 = vpop.eup %2890  ;;  %2351 = vst [vmem:[%s4648_s24 + $0x180] sm:$0xff] %v2259_v17  ;;  %v2119_v43 = vmul.f32 %v4593_v26, %v2023_v32  ;;  %v1844_v60 = vadd.f32 1e-05, %v1752_v36  ;;  %1649 = vadd.xlane.f32.xlu1 %v1512_v42  ;;  %1647 = vadd.xlane.f32.xlu0 %v1511_v28  ;;  %v5390_v17 = vld [vmem:[#allocation7_spill] sm:$0xff] }
 0x25e   : > { %v2893_v41 = vpop.eup %2892  ;;  %v2216_v57 = vadd.f32 %v4599_v33, %v2120_v37  ;;  %v2070_v4 = vmul.f32 %v2891_v63, %v5388_v0  ;;  %v1843_v1 = vadd.f32 1e-05, %v1751_v62  ;;  %v1670_v56 = vpop.xlane.xlu1 %1669  ;;  %v5391_v63 = vld [vmem:[#allocation8_spill] sm:$0xff] }
 0x25f   : > { %v1668_v30 = vpop.xlane.xlu0 %1667  ;;  %v2215_v16 = vadd.f32 %v4599_v33, %v2119_v43  ;;  %v2069_v42 = vmul.f32 %v2893_v41, %v5389_v9  ;;  %2902 = vrsqrt.f32 %v1844_v60  ;;  %v1798_v28 = vmul.f32 0.0078125, %v1670_v56 }
 0x260   : > { %2308 = vst [vmem:[%s4648_s24 + $0x28] sm:$0xff] %v2216_v57  ;;  %v2166_v45 = vmul.f32 %v4593_v26, %v2070_v4  ;;  %2904 = vrsqrt.f32 %v1843_v1  ;;  %v1797_v10 = vmul.f32 0.0078125, %v1668_v30  ;;  %v5392_v30 = vld [vmem:[#allocation9_spill] sm:$0xff] }
 0x261   : > { %v2895_v27 = vpop.eup %2894  ;;  %2307 = vst [vmem:[%s4648_s24 + $0x20] sm:$0xff] %v2215_v16  ;;  %v2165_v38 = vmul.f32 %v4593_v26, %v2069_v42  ;;  %v1890_v19 = vadd.f32 1e-05, %v1798_v28  ;;  %1741 = vadd.xlane.f32.xlu1 %v1558_v25  ;;  %1739 = vadd.xlane.f32.xlu0 %v1557_v49 }
 0x262   : > { %v2897_v40 = vpop.eup %2896  ;;  %v2262_v52 = vadd.f32 %v4599_v33, %v2166_v45  ;;  %v2026_v8 = vmul.f32 %v2895_v27, %v5390_v17  ;;  %v1889_v32 = vadd.f32 1e-05, %v1797_v10  ;;  %v1582_v36 = vpop.xlane.xlu1 %1581  ;;  %v5393_v45 = vld [vmem:[#allocation10_spill] sm:$0xff] }
 0x263   : > { %v1580_v37 = vpop.xlane.xlu0 %1579  ;;  %v2261_v62 = vadd.f32 %v4599_v33, %v2165_v38  ;;  %v2025_v43 = vmul.f32 %v2897_v40, %v5391_v63  ;;  %2906 = vrsqrt.f32 %v1890_v19  ;;  %v1754_v60 = vmul.f32 0.0078125, %v1582_v36  ;;  %v5394_v36 = vld [vmem:[#allocation11_spill] sm:$0xff] }
 0x264   : > { %2354 = vst [vmem:[%s4648_s24 + $0x198] sm:$0xff] %v2262_v52  ;;  %v2122_v41 = vmul.f32 %v4593_v26, %v2026_v8  ;;  %2908 = vrsqrt.f32 %v1889_v32  ;;  %v1753_v25 = vmul.f32 0.0078125, %v1580_v37 }
 0x265   : > { %v2899_v57 = vpop.eup %2898  ;;  %2353 = vst [vmem:[%s4648_s24 + $0x190] sm:$0xff] %v2261_v62  ;;  %v2121_v0 = vmul.f32 %v4593_v26, %v2025_v43  ;;  %v1846_v4 = vadd.f32 1e-05, %v1754_v60 }
 0x266   : > { %v2901_v1 = vpop.eup %2900  ;;  %v2218_v56 = vadd.f32 %v4599_v33, %v2122_v41  ;;  %v2072_v49 = vmul.f32 %v2899_v57, %v5392_v30  ;;  %v1845_v16 = vadd.f32 1e-05, %v1753_v25  ;;  %v1674_v9 = vpop.xlane.xlu1 %1673  ;;  %v5395_v41 = vld [vmem:[#allocation12_spill] sm:$0xff] }
 0x267   : > { %v1672_v42 = vpop.xlane.xlu0 %1671  ;;  %v2217_v28 = vadd.f32 %v4599_v33, %v2121_v0  ;;  %v2071_v10 = vmul.f32 %v2901_v1, %v5393_v45  ;;  %2910 = vrsqrt.f32 %v1846_v4  ;;  %v1800_v27 = vmul.f32 0.0078125, %v1674_v9  ;;  %v5396_v9 = vld [vmem:[#allocation13_spill] sm:$0xff] }
 0x268   : > { %2310 = vst [vmem:[%s4648_s24 + $0x38] sm:$0xff] %v2218_v56  ;;  %v2168_v38 = vmul.f32 %v4593_v26, %v2072_v49  ;;  %2912 = vrsqrt.f32 %v1845_v16  ;;  %v1799_v19 = vmul.f32 0.0078125, %v1672_v42 }
 0x269   : > { %v2903_v40 = vpop.eup %2902  ;;  %2309 = vst [vmem:[%s4648_s24 + $0x30] sm:$0xff] %v2217_v28  ;;  %v2167_v52 = vmul.f32 %v4593_v26, %v2071_v10  ;;  %v1892_v17 = vadd.f32 1e-05, %v1800_v27 }
 0x26a   : > { %v2905_v8 = vpop.eup %2904  ;;  %v2264_v32 = vadd.f32 %v4599_v33, %v2168_v38  ;;  %v2028_v37 = vmul.f32 %v2903_v40, %v5394_v36  ;;  %v1891_v62 = vadd.f32 1e-05, %v1799_v19  ;;  %v1586_v63 = vpop.xlane.xlu1 %1585  ;;  %v5397_v38 = vld [vmem:[#allocation14_spill] sm:$0xff] }
 0x26b   : > { %v1584_v43 = vpop.xlane.xlu0 %1583  ;;  %v2263_v60 = vadd.f32 %v4599_v33, %v2167_v52  ;;  %v2027_v25 = vmul.f32 %v2905_v8, %v5395_v41  ;;  %2914 = vrsqrt.f32 %v1892_v17  ;;  %v1756_v57 = vmul.f32 0.0078125, %v1586_v63  ;;  %v5398_v63 = vld [vmem:[#allocation15_spill] sm:$0xff] }
 0x26c   : > { %2356 = vst [vmem:[%s4648_s24 + $0x1a8] sm:$0xff] %v2264_v32  ;;  %v2124_v0 = vmul.f32 %v4593_v26, %v2028_v37  ;;  %2916 = vrsqrt.f32 %v1891_v62  ;;  %v1755_v4 = vmul.f32 0.0078125, %v1584_v43 }
 0x26d   : > { %v2907_v1 = vpop.eup %2906  ;;  %2355 = vst [vmem:[%s4648_s24 + $0x1a0] sm:$0xff] %v2263_v60  ;;  %v2123_v56 = vmul.f32 %v4593_v26, %v2027_v25  ;;  %v1848_v30 = vadd.f32 1e-05, %v1756_v57 }
 0x26e   : > { %v2909_v49 = vpop.eup %2908  ;;  %v2220_v16 = vadd.f32 %v4599_v33, %v2124_v0  ;;  %v2074_v42 = vmul.f32 %v2907_v1, %v5396_v9  ;;  %v1847_v28 = vadd.f32 1e-05, %v1755_v4  ;;  %v1678_v45 = vpop.xlane.xlu1 %1677  ;;  %v5399_v0 = vld [vmem:[#allocation16_spill] sm:$0xff] }
 0x26f   : > { %v1676_v10 = vpop.xlane.xlu0 %1675  ;;  %v2219_v27 = vadd.f32 %v4599_v33, %v2123_v56  ;;  %v2073_v19 = vmul.f32 %v2909_v49, %v5397_v38  ;;  %2918 = vrsqrt.f32 %v1848_v30  ;;  %v1802_v40 = vmul.f32 0.0078125, %v1678_v45  ;;  %v5400_v45 = vld [vmem:[#allocation17_spill] sm:$0xff] }
 0x270   : > { %2312 = vst [vmem:[%s4648_s24 + $0x48] sm:$0xff] %v2220_v16  ;;  %v2170_v52 = vmul.f32 %v4593_v26, %v2074_v42  ;;  %2920 = vrsqrt.f32 %v1847_v28  ;;  %v1801_v17 = vmul.f32 0.0078125, %v1676_v10 }
 0x271   : > { %v2911_v8 = vpop.eup %2910  ;;  %2311 = vst [vmem:[%s4648_s24 + $0x40] sm:$0xff] %v2219_v27  ;;  %v2169_v32 = vmul.f32 %v4593_v26, %v2073_v19  ;;  %v1894_v36 = vadd.f32 1e-05, %v1802_v40 }
 0x272   : > { %v2913_v37 = vpop.eup %2912  ;;  %v2266_v62 = vadd.f32 %v4599_v33, %v2170_v52  ;;  %v2030_v43 = vmul.f32 %v2911_v8, %v5398_v63  ;;  %v1893_v60 = vadd.f32 1e-05, %v1801_v17  ;;  %v1590_v41 = vpop.xlane.xlu1 %1589  ;;  %v5401_v52 = vld [vmem:[#allocation18_spill] sm:$0xff] }
 0x273   : > { %v1588_v25 = vpop.xlane.xlu0 %1587  ;;  %v2265_v57 = vadd.f32 %v4599_v33, %v2169_v32  ;;  %v2029_v4 = vmul.f32 %v2913_v37, %v5399_v0  ;;  %2922 = vrsqrt.f32 %v1894_v36  ;;  %v1758_v1 = vmul.f32 0.0078125, %v1590_v41  ;;  %v5402_v41 = vld [vmem:[#allocation19_spill] sm:$0xff] }
 0x274   : > { %2358 = vst [vmem:[%s4648_s24 + $0x1b8] sm:$0xff] %v2266_v62  ;;  %v2126_v56 = vmul.f32 %v4593_v26, %v2030_v43  ;;  %2924 = vrsqrt.f32 %v1893_v60  ;;  %v1757_v30 = vmul.f32 0.0078125, %v1588_v25 }
 0x275   : > { %v2915_v49 = vpop.eup %2914  ;;  %2357 = vst [vmem:[%s4648_s24 + $0x1b0] sm:$0xff] %v2265_v57  ;;  %v2125_v16 = vmul.f32 %v4593_v26, %v2029_v4  ;;  %v1850_v9 = vadd.f32 1e-05, %v1758_v1 }
 0x276   : > { %v2917_v42 = vpop.eup %2916  ;;  %v2222_v28 = vadd.f32 %v4599_v33, %v2126_v56  ;;  %v2076_v10 = vmul.f32 %v2915_v49, %v5400_v45  ;;  %v1849_v27 = vadd.f32 1e-05, %v1757_v30  ;;  %v1682_v38 = vpop.xlane.xlu1 %1681  ;;  %v5403_v56 = vld [vmem:[#allocation20_spill] sm:$0xff] }
 0x277   : > { %v1680_v19 = vpop.xlane.xlu0 %1679  ;;  %v2221_v40 = vadd.f32 %v4599_v33, %v2125_v16  ;;  %v2075_v17 = vmul.f32 %v2917_v42, %v5401_v52  ;;  %2926 = vrsqrt.f32 %v1850_v9  ;;  %v1804_v8 = vmul.f32 0.0078125, %v1682_v38  ;;  %v5404_v38 = vld [vmem:[#allocation21_spill] sm:$0xff] }
 0x278   : > { %2314 = vst [vmem:[%s4648_s24 + $0x58] sm:$0xff] %v2222_v28  ;;  %v2172_v32 = vmul.f32 %v4593_v26, %v2076_v10  ;;  %2928 = vrsqrt.f32 %v1849_v27  ;;  %v1803_v36 = vmul.f32 0.0078125, %v1680_v19 }
 0x279   : > { %v2919_v37 = vpop.eup %2918  ;;  %2313 = vst [vmem:[%s4648_s24 + $0x50] sm:$0xff] %v2221_v40  ;;  %v2171_v62 = vmul.f32 %v4593_v26, %v2075_v17  ;;  %v1896_v63 = vadd.f32 1e-05, %v1804_v8 }
 0x27a   : > { %v2921_v43 = vpop.eup %2920  ;;  %v2268_v60 = vadd.f32 %v4599_v33, %v2172_v32  ;;  %v2032_v25 = vmul.f32 %v2919_v37, %v5402_v41  ;;  %v1895_v57 = vadd.f32 1e-05, %v1803_v36  ;;  %v1594_v0 = vpop.xlane.xlu1 %1593  ;;  %v5405_v32 = vld [vmem:[#allocation22_spill] sm:$0xff] }
 0x27b   : > { %v1592_v4 = vpop.xlane.xlu0 %1591  ;;  %v2267_v1 = vadd.f32 %v4599_v33, %v2171_v62  ;;  %v2031_v30 = vmul.f32 %v2921_v43, %v5403_v56  ;;  %2930 = vrsqrt.f32 %v1896_v63  ;;  %v1760_v49 = vmul.f32 0.0078125, %v1594_v0  ;;  %v5406_v0 = vld [vmem:[#allocation23_spill] sm:$0xff] }
 0x27c   : > { %2360 = vst [vmem:[%s4648_s24 + $0x1c8] sm:$0xff] %v2268_v60  ;;  %v2128_v16 = vmul.f32 %v4593_v26, %v2032_v25  ;;  %2932 = vrsqrt.f32 %v1895_v57  ;;  %v1759_v9 = vmul.f32 0.0078125, %v1592_v4 }
 0x27d   : > { %v2923_v42 = vpop.eup %2922  ;;  %2359 = vst [vmem:[%s4648_s24 + $0x1c0] sm:$0xff] %v2267_v1  ;;  %v2127_v28 = vmul.f32 %v4593_v26, %v2031_v30  ;;  %v1852_v45 = vadd.f32 1e-05, %v1760_v49 }
 0x27e   : > { %v2925_v10 = vpop.eup %2924  ;;  %v2224_v27 = vadd.f32 %v4599_v33, %v2128_v16  ;;  %v2078_v19 = vmul.f32 %v2923_v42, %v5404_v38  ;;  %v1851_v40 = vadd.f32 1e-05, %v1759_v9  ;;  %v1686_v52 = vpop.xlane.xlu1 %1685  ;;  %v5407_v16 = vld [vmem:[#allocation24_spill] sm:$0xff] }
 0x27f   : > { %v1684_v17 = vpop.xlane.xlu0 %1683  ;;  %v2223_v8 = vadd.f32 %v4599_v33, %v2127_v28  ;;  %v2077_v36 = vmul.f32 %v2925_v10, %v5405_v32  ;;  %2934 = vrsqrt.f32 %v1852_v45  ;;  %v1806_v37 = vmul.f32 0.0078125, %v1686_v52  ;;  %v5408_v52 = vld [vmem:[#allocation25_spill] sm:$0xff] }
 0x280   : > { %2316 = vst [vmem:[%s4648_s24 + $0x68] sm:$0xff] %v2224_v27  ;;  %v2174_v62 = vmul.f32 %v4593_v26, %v2078_v19  ;;  %2936 = vrsqrt.f32 %v1851_v40  ;;  %v1805_v63 = vmul.f32 0.0078125, %v1684_v17 }
 0x281   : > { %v2927_v43 = vpop.eup %2926  ;;  %2315 = vst [vmem:[%s4648_s24 + $0x60] sm:$0xff] %v2223_v8  ;;  %v2173_v60 = vmul.f32 %v4593_v26, %v2077_v36  ;;  %v1898_v41 = vadd.f32 1e-05, %v1806_v37 }
 0x282   : > { %v2929_v25 = vpop.eup %2928  ;;  %v2270_v57 = vadd.f32 %v4599_v33, %v2174_v62  ;;  %v2034_v4 = vmul.f32 %v2927_v43, %v5406_v0  ;;  %v1897_v1 = vadd.f32 1e-05, %v1805_v63  ;;  %v1598_v56 = vpop.xlane.xlu1 %1597  ;;  %v5409_v62 = vld [vmem:[#allocation26_spill] sm:$0xff] }
 0x283   : > { %v1596_v30 = vpop.xlane.xlu0 %1595  ;;  %v2269_v49 = vadd.f32 %v4599_v33, %v2173_v60  ;;  %v2033_v9 = vmul.f32 %v2929_v25, %v5407_v16  ;;  %2938 = vrsqrt.f32 %v1898_v41  ;;  %v1762_v42 = vmul.f32 0.0078125, %v1598_v56  ;;  %v5410_v56 = vld [vmem:[#allocation27_spill] sm:$0xff] }
 0x284   : > { %2362 = vst [vmem:[%s4648_s24 + $0x1d8] sm:$0xff] %v2270_v57  ;;  %v2130_v28 = vmul.f32 %v4593_v26, %v2034_v4  ;;  %2940 = vrsqrt.f32 %v1897_v1  ;;  %v1761_v45 = vmul.f32 0.0078125, %v1596_v30 }
 0x285   : > { %v2931_v10 = vpop.eup %2930  ;;  %2361 = vst [vmem:[%s4648_s24 + $0x1d0] sm:$0xff] %v2269_v49  ;;  %v2129_v27 = vmul.f32 %v4593_v26, %v2033_v9  ;;  %v1854_v38 = vadd.f32 1e-05, %v1762_v42 }
 0x286   : > { %v2933_v19 = vpop.eup %2932  ;;  %v2226_v40 = vadd.f32 %v4599_v33, %v2130_v28  ;;  %v2080_v17 = vmul.f32 %v2931_v10, %v5408_v52  ;;  %v1853_v8 = vadd.f32 1e-05, %v1761_v45  ;;  %v1690_v32 = vpop.xlane.xlu1 %1689  ;;  %v5411_v28 = vld [vmem:[#allocation28_spill] sm:$0xff] }
 0x287   : > { %v1688_v36 = vpop.xlane.xlu0 %1687  ;;  %v2225_v37 = vadd.f32 %v4599_v33, %v2129_v27  ;;  %v2079_v63 = vmul.f32 %v2933_v19, %v5409_v62  ;;  %2942 = vrsqrt.f32 %v1854_v38  ;;  %v1808_v43 = vmul.f32 0.0078125, %v1690_v32  ;;  %v5412_v32 = vld [vmem:[#allocation29_spill] sm:$0xff] }
 0x288   : > { %2318 = vst [vmem:[%s4648_s24 + $0x78] sm:$0xff] %v2226_v40  ;;  %v2176_v60 = vmul.f32 %v4593_v26, %v2080_v17  ;;  %2944 = vrsqrt.f32 %v1853_v8  ;;  %v1807_v41 = vmul.f32 0.0078125, %v1688_v36 }
 0x289   : > { %v2935_v25 = vpop.eup %2934  ;;  %2317 = vst [vmem:[%s4648_s24 + $0x70] sm:$0xff] %v2225_v37  ;;  %v2175_v57 = vmul.f32 %v4593_v26, %v2079_v63  ;;  %v1900_v0 = vadd.f32 1e-05, %v1808_v43 }
 0x28a   : > { %v2937_v4 = vpop.eup %2936  ;;  %v2272_v1 = vadd.f32 %v4599_v33, %v2176_v60  ;;  %v2036_v30 = vmul.f32 %v2935_v25, %v5410_v56  ;;  %v1899_v49 = vadd.f32 1e-05, %v1807_v41  ;;  %v1602_v16 = vpop.xlane.xlu1 %1601  ;;  %v5413_v60 = vld [vmem:[#allocation30_spill] sm:$0xff] }
 0x28b   : > { %v1600_v9 = vpop.xlane.xlu0 %1599  ;;  %v2271_v42 = vadd.f32 %v4599_v33, %v2175_v57  ;;  %v2035_v45 = vmul.f32 %v2937_v4, %v5411_v28  ;;  %2946 = vrsqrt.f32 %v1900_v0  ;;  %v1764_v10 = vmul.f32 0.0078125, %v1602_v16  ;;  %v5414_v16 = vld [vmem:[#allocation31_spill] sm:$0xff] }
 0x28c   : > { %2364 = vst [vmem:[%s4648_s24 + $0x1e8] sm:$0xff] %v2272_v1  ;;  %v2132_v27 = vmul.f32 %v4593_v26, %v2036_v30  ;;  %2948 = vrsqrt.f32 %v1899_v49  ;;  %v1763_v38 = vmul.f32 0.0078125, %v1600_v9 }
 0x28d   : > { %v2939_v19 = vpop.eup %2938  ;;  %2363 = vst [vmem:[%s4648_s24 + $0x1e0] sm:$0xff] %v2271_v42  ;;  %v2131_v40 = vmul.f32 %v4593_v26, %v2035_v45  ;;  %v1856_v52 = vadd.f32 1e-05, %v1764_v10 }
 0x28e   : > { %v2941_v17 = vpop.eup %2940  ;;  %v2228_v8 = vadd.f32 %v4599_v33, %v2132_v27  ;;  %v2082_v36 = vmul.f32 %v2939_v19, %v5412_v32  ;;  %v1855_v37 = vadd.f32 1e-05, %v1763_v38  ;;  %v1694_v62 = vpop.xlane.xlu1 %1693  ;;  %v5415_v27 = vld [vmem:[#allocation32_spill] sm:$0xff] }
 0x28f   : > { %v1692_v63 = vpop.xlane.xlu0 %1691  ;;  %v2227_v43 = vadd.f32 %v4599_v33, %v2131_v40  ;;  %v2081_v41 = vmul.f32 %v2941_v17, %v5413_v60  ;;  %2950 = vrsqrt.f32 %v1856_v52  ;;  %v1810_v25 = vmul.f32 0.0078125, %v1694_v62  ;;  %v5416_v62 = vld [vmem:[#allocation33_spill] sm:$0xff] }
 0x290   : > { %2320 = vst [vmem:[%s4648_s24 + $0x88] sm:$0xff] %v2228_v8  ;;  %v2178_v57 = vmul.f32 %v4593_v26, %v2082_v36  ;;  %2952 = vrsqrt.f32 %v1855_v37  ;;  %v1809_v0 = vmul.f32 0.0078125, %v1692_v63 }
 0x291   : > { %v2943_v4 = vpop.eup %2942  ;;  %2319 = vst [vmem:[%s4648_s24 + $0x80] sm:$0xff] %v2227_v43  ;;  %v2177_v1 = vmul.f32 %v4593_v26, %v2081_v41  ;;  %v1902_v56 = vadd.f32 1e-05, %v1810_v25 }
 0x292   : > { %v2945_v30 = vpop.eup %2944  ;;  %v2274_v49 = vadd.f32 %v4599_v33, %v2178_v57  ;;  %v2038_v9 = vmul.f32 %v2943_v4, %v5414_v16  ;;  %v1901_v42 = vadd.f32 1e-05, %v1809_v0  ;;  %v1606_v28 = vpop.xlane.xlu1 %1605  ;;  %v5417_v57 = vld [vmem:[#allocation34_spill] sm:$0xff] }
 0x293   : > { %v1604_v45 = vpop.xlane.xlu0 %1603  ;;  %v2273_v10 = vadd.f32 %v4599_v33, %v2177_v1  ;;  %v2037_v38 = vmul.f32 %v2945_v30, %v5415_v27  ;;  %2954 = vrsqrt.f32 %v1902_v56  ;;  %v1766_v19 = vmul.f32 0.0078125, %v1606_v28 }
 0x294   : > { %2366 = vst [vmem:[%s4648_s24 + $0x1f8] sm:$0xff] %v2274_v49  ;;  %v2134_v40 = vmul.f32 %v4593_v26, %v2038_v9  ;;  %2956 = vrsqrt.f32 %v1901_v42  ;;  %v1765_v52 = vmul.f32 0.0078125, %v1604_v45 }
 0x295   : > { %v2947_v17 = vpop.eup %2946  ;;  %2365 = vst [vmem:[%s4648_s24 + $0x1f0] sm:$0xff] %v2273_v10  ;;  %v2133_v8 = vmul.f32 %v4593_v26, %v2037_v38  ;;  %v1858_v32 = vadd.f32 1e-05, %v1766_v19 }
 0x296   : > { %v2949_v36 = vpop.eup %2948  ;;  %v2230_v37 = vadd.f32 %v4599_v33, %v2134_v40  ;;  %v2084_v63 = vmul.f32 %v2947_v17, %v5416_v62  ;;  %v1857_v43 = vadd.f32 1e-05, %v1765_v52  ;;  %v1698_v60 = vpop.xlane.xlu1 %1697 }
 0x297   : > { %v1696_v41 = vpop.xlane.xlu0 %1695  ;;  %v2229_v25 = vadd.f32 %v4599_v33, %v2133_v8  ;;  %v2083_v0 = vmul.f32 %v2949_v36, %v5417_v57  ;;  %2958 = vrsqrt.f32 %v1858_v32  ;;  %v1812_v4 = vmul.f32 0.0078125, %v1698_v60 }
 0x298   : > { %2322 = vst [vmem:[%s4648_s24 + $0x98] sm:$0xff] %v2230_v37  ;;  %v2180_v1 = vmul.f32 %v4593_v26, %v2084_v63  ;;  %2960 = vrsqrt.f32 %v1857_v43  ;;  %v1811_v56 = vmul.f32 0.0078125, %v1696_v41 }
 0x299   : > { %v2951_v30 = vpop.eup %2950  ;;  %2321 = vst [vmem:[%s4648_s24 + $0x90] sm:$0xff] %v2229_v25  ;;  %v2179_v49 = vmul.f32 %v4593_v26, %v2083_v0  ;;  %v1904_v16 = vadd.f32 1e-05, %v1812_v4 }
 0x29a   : > { %v2953_v9 = vpop.eup %2952  ;;  %v2276_v42 = vadd.f32 %v4599_v33, %v2180_v1  ;;  %v2040_v28 = vmul.f32 %v2951_v30, %v4279_v54  ;;  %v1903_v45 = vadd.f32 1e-05, %v1811_v56  ;;  %v1610_v10 = vpop.xlane.xlu1 %1609 }
 0x29b   : > { %v1608_v27 = vpop.xlane.xlu0 %1607  ;;  %v2275_v38 = vadd.f32 %v4599_v33, %v2179_v49  ;;  %v2039_v19 = vmul.f32 %v2953_v9, %v4282_v34  ;;  %2962 = vrsqrt.f32 %v1904_v16  ;;  %v1768_v40 = vmul.f32 0.0078125, %v1610_v10 }
 0x29c   : > { %2368 = vst [vmem:[%s4648_s24 + $0x208] sm:$0xff] %v2276_v42  ;;  %v2136_v52 = vmul.f32 %v4593_v26, %v2040_v28  ;;  %2964 = vrsqrt.f32 %v1903_v45  ;;  %v1767_v17 = vmul.f32 0.0078125, %v1608_v27  ;;  %v5418_v28 = vld [vmem:[#allocation35_spill] sm:$0xff] }
 0x29d   : > { %v2955_v8 = vpop.eup %2954  ;;  %2367 = vst [vmem:[%s4648_s24 + $0x200] sm:$0xff] %v2275_v38  ;;  %v2135_v32 = vmul.f32 %v4593_v26, %v2039_v19  ;;  %v1860_v54 = vadd.f32 1e-05, %v1768_v40 }
 0x29e   : > { %v2957_v36 = vpop.eup %2956  ;;  %v2232_v37 = vadd.f32 %v4599_v33, %v2136_v52  ;;  %v2086_v62 = vmul.f32 %v2955_v8, %v4293_v61  ;;  %v1859_v34 = vadd.f32 1e-05, %v1767_v17  ;;  %v1702_v63 = vpop.xlane.xlu1 %1701 }
 0x29f   : > { %v1700_v43 = vpop.xlane.xlu0 %1699  ;;  %v2231_v60 = vadd.f32 %v4599_v33, %v2135_v32  ;;  %v2085_v41 = vmul.f32 %v2957_v36, %v4296_v29  ;;  %2966 = vrsqrt.f32 %v1860_v54  ;;  %v1814_v25 = vmul.f32 0.0078125, %v1702_v63 }
 0x2a0   : > { %2324 = vst [vmem:[%s4648_s24 + $0xa8] sm:$0xff] %v2232_v37  ;;  %v2182_v57 = vmul.f32 %v4593_v26, %v2086_v62  ;;  %2968 = vrsqrt.f32 %v1859_v34  ;;  %v1813_v0 = vmul.f32 0.0078125, %v1700_v43 }
 0x2a1   : > { %v2959_v4 = vpop.eup %2958  ;;  %2323 = vst [vmem:[%s4648_s24 + $0xa0] sm:$0xff] %v2231_v60  ;;  %v2181_v1 = vmul.f32 %v4593_v26, %v2085_v41  ;;  %v1906_v61 = vadd.f32 1e-05, %v1814_v25 }
 0x2a2   : > { %v2961_v56 = vpop.eup %2960  ;;  %v2278_v30 = vadd.f32 %v4599_v33, %v2182_v57  ;;  %v2042_v49 = vmul.f32 %v2959_v4, %v4303_v20  ;;  %v1905_v29 = vadd.f32 1e-05, %v1813_v0  ;;  %v1614_v16 = vpop.xlane.xlu1 %1613 }
 0x2a3   : > { %v1612_v9 = vpop.xlane.xlu0 %1611  ;;  %v2277_v42 = vadd.f32 %v4599_v33, %v2181_v1  ;;  %v2041_v45 = vmul.f32 %v2961_v56, %v5418_v28  ;;  %2970 = vrsqrt.f32 %v1906_v61  ;;  %v1770_v10 = vmul.f32 0.0078125, %v1614_v16 }
 0x2a4   : > { %2370 = vst [vmem:[%s4648_s24 + $0x218] sm:$0xff] %v2278_v30  ;;  %v2138_v27 = vmul.f32 %v4593_v26, %v2042_v49  ;;  %2972 = vrsqrt.f32 %v1905_v29  ;;  %v1769_v38 = vmul.f32 0.0078125, %v1612_v9 }
 0x2a5   : > { %v2963_v19 = vpop.eup %2962  ;;  %2369 = vst [vmem:[%s4648_s24 + $0x210] sm:$0xff] %v2277_v42  ;;  %v2137_v40 = vmul.f32 %v4593_v26, %v2041_v45  ;;  %v1862_v20 = vadd.f32 1e-05, %v1770_v10 }
 0x2a6   : > { %v2965_v52 = vpop.eup %2964  ;;  %v2234_v17 = vadd.f32 %v4599_v33, %v2138_v27  ;;  %v2088_v8 = vmul.f32 %v2963_v19, %v4327_v3  ;;  %v1861_v32 = vadd.f32 1e-05, %v1769_v38  ;;  %v1706_v54 = vpop.xlane.xlu1 %1705 }
 0x2a7   : > { %v1704_v36 = vpop.xlane.xlu0 %1703  ;;  %v2233_v37 = vadd.f32 %v4599_v33, %v2137_v40  ;;  %v2087_v62 = vmul.f32 %v2965_v52, %v4330_v44  ;;  %2974 = vrsqrt.f32 %v1862_v20  ;;  %v1816_v34 = vmul.f32 0.0078125, %v1706_v54 }
 0x2a8   : > { %2326 = vst [vmem:[%s4648_s24 + $0xb8] sm:$0xff] %v2234_v17  ;;  %v2184_v63 = vmul.f32 %v4593_v26, %v2088_v8  ;;  %2976 = vrsqrt.f32 %v1861_v32  ;;  %v1815_v43 = vmul.f32 0.0078125, %v1704_v36 }
 0x2a9   : > { %v2967_v60 = vpop.eup %2966  ;;  %2325 = vst [vmem:[%s4648_s24 + $0xb0] sm:$0xff] %v2233_v37  ;;  %v2183_v41 = vmul.f32 %v4593_v26, %v2087_v62  ;;  %v1908_v3 = vadd.f32 1e-05, %v1816_v34 }
 0x2aa   : > { %v2969_v25 = vpop.eup %2968  ;;  %v2280_v57 = vadd.f32 %v4599_v33, %v2184_v63  ;;  %v2044_v0 = vmul.f32 %v2967_v60, %v4341_v47  ;;  %v1907_v44 = vadd.f32 1e-05, %v1815_v43  ;;  %v1618_v4 = vpop.xlane.xlu1 %1617 }
 0x2ab   : > { %v1616_v1 = vpop.xlane.xlu0 %1615  ;;  %v2279_v61 = vadd.f32 %v4599_v33, %v2183_v41  ;;  %v2043_v56 = vmul.f32 %v2969_v25, %v4344_v50  ;;  %2978 = vrsqrt.f32 %v1908_v3  ;;  %v1772_v30 = vmul.f32 0.0078125, %v1618_v4 }
 0x2ac   : > { %2372 = vst [vmem:[%s4648_s24 + $0x228] sm:$0xff] %v2280_v57  ;;  %v2140_v49 = vmul.f32 %v4593_v26, %v2044_v0  ;;  %2980 = vrsqrt.f32 %v1907_v44  ;;  %v1771_v29 = vmul.f32 0.0078125, %v1616_v1 }
 0x2ad   : > { %v2971_v16 = vpop.eup %2970  ;;  %2371 = vst [vmem:[%s4648_s24 + $0x220] sm:$0xff] %v2279_v61  ;;  %v2139_v9 = vmul.f32 %v4593_v26, %v2043_v56  ;;  %v1864_v47 = vadd.f32 1e-05, %v1772_v30 }
 0x2ae   : > { %v2973_v42 = vpop.eup %2972  ;;  %v2236_v28 = vadd.f32 %v4599_v33, %v2140_v49  ;;  %v2090_v45 = vmul.f32 %v2971_v16, %v4351_v35  ;;  %v1863_v50 = vadd.f32 1e-05, %v1771_v29  ;;  %v1710_v10 = vpop.xlane.xlu1 %1709 }
 0x2af   : > { %v1708_v27 = vpop.xlane.xlu0 %1707  ;;  %v2235_v38 = vadd.f32 %v4599_v33, %v2139_v9  ;;  %v2089_v19 = vmul.f32 %v2973_v42, %v4354_v58  ;;  %2982 = vrsqrt.f32 %v1864_v47  ;;  %v1818_v40 = vmul.f32 0.0078125, %v1710_v10 }
 0x2b0   : > { %2328 = vst [vmem:[%s4648_s24 + $0xc8] sm:$0xff] %v2236_v28  ;;  %v2186_v20 = vmul.f32 %v4593_v26, %v2090_v45  ;;  %2984 = vrsqrt.f32 %v1863_v50  ;;  %v1817_v52 = vmul.f32 0.0078125, %v1708_v27 }
 0x2b1   : > { %v2975_v17 = vpop.eup %2974  ;;  %2327 = vst [vmem:[%s4648_s24 + $0xc0] sm:$0xff] %v2235_v38  ;;  %v2185_v8 = vmul.f32 %v4593_v26, %v2089_v19  ;;  %v1910_v35 = vadd.f32 1e-05, %v1818_v40 }
 0x2b2   : > { %v2977_v32 = vpop.eup %2976  ;;  %v2282_v54 = vadd.f32 %v4599_v33, %v2186_v20  ;;  %v2046_v36 = vmul.f32 %v2975_v17, %v4376_v39  ;;  %v1909_v58 = vadd.f32 1e-05, %v1817_v52  ;;  %v1622_v37 = vpop.xlane.xlu1 %1621 }
 0x2b3   : > { %v1620_v62 = vpop.xlane.xlu0 %1619  ;;  %v2281_v34 = vadd.f32 %v4599_v33, %v2185_v8  ;;  %v2045_v63 = vmul.f32 %v2977_v32, %v4379_v18  ;;  %2986 = vrsqrt.f32 %v1910_v35  ;;  %v1774_v43 = vmul.f32 0.0078125, %v1622_v37 }
 0x2b4   : > { %2374 = vst [vmem:[%s4648_s24 + $0x238] sm:$0xff] %v2282_v54  ;;  %v2142_v60 = vmul.f32 %v4593_v26, %v2046_v36  ;;  %2988 = vrsqrt.f32 %v1909_v58  ;;  %v1773_v41 = vmul.f32 0.0078125, %v1620_v62 }
 0x2b5   : > { %v2979_v3 = vpop.eup %2978  ;;  %2373 = vst [vmem:[%s4648_s24 + $0x230] sm:$0xff] %v2281_v34  ;;  %v2141_v25 = vmul.f32 %v4593_v26, %v2045_v63  ;;  %v1866_v39 = vadd.f32 1e-05, %v1774_v43 }
 0x2b6   : > { %v2981_v57 = vpop.eup %2980  ;;  %v2238_v0 = vadd.f32 %v4599_v33, %v2142_v60  ;;  %v2092_v44 = vmul.f32 %v2979_v3, %v4390_v55  ;;  %v1865_v18 = vadd.f32 1e-05, %v1773_v41  ;;  %v1714_v4 = vpop.xlane.xlu1 %1713 }
 0x2b7   : > { %v1712_v1 = vpop.xlane.xlu0 %1711  ;;  %v2237_v61 = vadd.f32 %v4599_v33, %v2141_v25  ;;  %v2091_v56 = vmul.f32 %v2981_v57, %v4393_v59  ;;  %2990 = vrsqrt.f32 %v1866_v39  ;;  %v1820_v30 = vmul.f32 0.0078125, %v1714_v4 }
 0x2b8   : > { %2330 = vst [vmem:[%s4648_s24 + $0xd8] sm:$0xff] %v2238_v0  ;;  %v2188_v49 = vmul.f32 %v4593_v26, %v2092_v44  ;;  %2992 = vrsqrt.f32 %v1865_v18  ;;  %v1819_v29 = vmul.f32 0.0078125, %v1712_v1 }
 0x2b9   : > { %v2983_v16 = vpop.eup %2982  ;;  %2329 = vst [vmem:[%s4648_s24 + $0xd0] sm:$0xff] %v2237_v61  ;;  %v2187_v9 = vmul.f32 %v4593_v26, %v2091_v56  ;;  %v1912_v55 = vadd.f32 1e-05, %v1820_v30 }
 0x2ba   : > { %v2985_v47 = vpop.eup %2984  ;;  %v2284_v42 = vadd.f32 %v4599_v33, %v2188_v49  ;;  %v2048_v28 = vmul.f32 %v2983_v16, %v4400_v7  ;;  %v1911_v59 = vadd.f32 1e-05, %v1819_v29  ;;  %v1626_v45 = vpop.xlane.xlu1 %1625  ;;  %v5419_v49 = vld [vmem:[#allocation36_spill] sm:$0xff] }
 0x2bb   : > { %v1624_v50 = vpop.xlane.xlu0 %1623  ;;  %v2283_v10 = vadd.f32 %v4599_v33, %v2187_v9  ;;  %v2047_v27 = vmul.f32 %v2985_v47, %v4403_v15  ;;  %2994 = vrsqrt.f32 %v1912_v55  ;;  %v1776_v38 = vmul.f32 0.0078125, %v1626_v45  ;;  %v5420_v47 = vld [vmem:[#allocation37_spill] sm:$0xff] }
 0x2bc   : > { %2376 = vst [vmem:[%s4648_s24 + $0x248] sm:$0xff] %v2284_v42  ;;  %v2144_v19 = vmul.f32 %v4593_v26, %v2048_v28  ;;  %2996 = vrsqrt.f32 %v1911_v59  ;;  %v1775_v40 = vmul.f32 0.0078125, %v1624_v50 }
 0x2bd   : > { %v2987_v20 = vpop.eup %2986  ;;  %2375 = vst [vmem:[%s4648_s24 + $0x240] sm:$0xff] %v2283_v10  ;;  %v2143_v52 = vmul.f32 %v4593_v26, %v2047_v27  ;;  %v1868_v7 = vadd.f32 1e-05, %v1776_v38 }
 0x2be   : > { %v2989_v17 = vpop.eup %2988  ;;  %v2240_v8 = vadd.f32 %v4599_v33, %v2144_v19  ;;  %v2094_v35 = vmul.f32 %v2987_v20, %v4424_v21  ;;  %v1867_v15 = vadd.f32 1e-05, %v1775_v40  ;;  %v1718_v32 = vpop.xlane.xlu1 %1717  ;;  %v5421_v40 = vld [vmem:[#allocation38_spill] sm:$0xff] }
 0x2bf   : > { %v1716_v54 = vpop.xlane.xlu0 %1715  ;;  %v2239_v36 = vadd.f32 %v4599_v33, %v2143_v52  ;;  %v2093_v58 = vmul.f32 %v2989_v17, %v4427_v22  ;;  %2998 = vrsqrt.f32 %v1868_v7  ;;  %v1822_v37 = vmul.f32 0.0078125, %v1718_v32 }
 0x2c0   : > { %2332 = vst [vmem:[%s4648_s24 + $0xe8] sm:$0xff] %v2240_v8  ;;  %v2190_v62 = vmul.f32 %v4593_v26, %v2094_v35  ;;  %3000 = vrsqrt.f32 %v1867_v15  ;;  %v1821_v34 = vmul.f32 0.0078125, %v1716_v54  ;;  %v5422_v35 = vld [vmem:[#allocation67_spill] sm:$0xff] }
 0x2c1   : > { %v2991_v63 = vpop.eup %2990  ;;  %2331 = vst [vmem:[%s4648_s24 + $0xe0] sm:$0xff] %v2239_v36  ;;  %v2189_v43 = vmul.f32 %v4593_v26, %v2093_v58  ;;  %v1914_v21 = vadd.f32 1e-05, %v1822_v37 }
 0x2c2   : > { %v2993_v60 = vpop.eup %2992  ;;  %v2286_v41 = vadd.f32 %v4599_v33, %v2190_v62  ;;  %v2050_v3 = vmul.f32 %v2991_v63, %v4438_v2  ;;  %v1913_v22 = vadd.f32 1e-05, %v1821_v34  ;;  %v1630_v25 = vpop.xlane.xlu1 %1629 }
 0x2c3   : > { %v1628_v39 = vpop.xlane.xlu0 %1627  ;;  %v2285_v57 = vadd.f32 %v4599_v33, %v2189_v43  ;;  %v2049_v0 = vmul.f32 %v2993_v60, %v4441_v6  ;;  %3002 = vrsqrt.f32 %v1914_v21  ;;  %v1778_v44 = vmul.f32 0.0078125, %v1630_v25  ;;  %v5423_v43 = vld [vmem:[#allocation39_spill] sm:$0xff]  ;;  %v5424_v25 = vld [vmem:[#allocation40_spill] sm:$0xff] }
 0x2c4   : > { %2378 = vst [vmem:[%s4648_s24 + $0x258] sm:$0xff] %v2286_v41  ;;  %v2146_v18 = vmul.f32 %v4593_v26, %v2050_v3  ;;  %3004 = vrsqrt.f32 %v1913_v22  ;;  %v1777_v4 = vmul.f32 0.0078125, %v1628_v39 }
 0x2c5   : > { %v2995_v1 = vpop.eup %2994  ;;  %2377 = vst [vmem:[%s4648_s24 + $0x250] sm:$0xff] %v2285_v57  ;;  %v2145_v61 = vmul.f32 %v4593_v26, %v2049_v0  ;;  %v1870_v2 = vadd.f32 1e-05, %v1778_v44 }
 0x2c6   : > { %v2997_v56 = vpop.eup %2996  ;;  %v2242_v30 = vadd.f32 %v4599_v33, %v2146_v18  ;;  %v2096_v29 = vmul.f32 %v2995_v1, %v5419_v49  ;;  %v1869_v6 = vadd.f32 1e-05, %v1777_v4  ;;  %v1722_v16 = vpop.xlane.xlu1 %1721 }
 0x2c7   : > { %v1720_v9 = vpop.xlane.xlu0 %1719  ;;  %v2241_v55 = vadd.f32 %v4599_v33, %v2145_v61  ;;  %v2095_v42 = vmul.f32 %v2997_v56, %v5420_v47  ;;  %3006 = vrsqrt.f32 %v1870_v2  ;;  %v1824_v28 = vmul.f32 0.0078125, %v1722_v16  ;;  %v5425_v56 = vld [vmem:[#allocation41_spill] sm:$0xff] }
 0x2c8   : > { %2334 = vst [vmem:[%s4648_s24 + $0xf8] sm:$0xff] %v2242_v30  ;;  %v2192_v59 = vmul.f32 %v4593_v26, %v2096_v29  ;;  %3008 = vrsqrt.f32 %v1869_v6  ;;  %v1823_v45 = vmul.f32 0.0078125, %v1720_v9  ;;  %v5426_v9 = vld [vmem:[#allocation42_spill] sm:$0xff] }
 0x2c9   : > { %v2999_v50 = vpop.eup %2998  ;;  %2333 = vst [vmem:[%s4648_s24 + $0xf0] sm:$0xff] %v2241_v55  ;;  %v2191_v10 = vmul.f32 %v4593_v26, %v2095_v42  ;;  %v1916_v27 = vadd.f32 1e-05, %v1824_v28 }
 0x2ca   : > { %v3001_v38 = vpop.eup %3000  ;;  %v2288_v19 = vadd.f32 %v4599_v33, %v2192_v59  ;;  %v2052_v20 = vmul.f32 %v2999_v50, %v5421_v40  ;;  %v1915_v52 = vadd.f32 1e-05, %v1823_v45  ;;  %v1634_v7 = vpop.xlane.xlu1 %1633 }
 0x2cb   : > { %v1632_v17 = vpop.xlane.xlu0 %1631  ;;  %v2287_v8 = vadd.f32 %v4599_v33, %v2191_v10  ;;  %v2051_v15 = vmul.f32 %v3001_v38, %v5422_v35  ;;  %3010 = vrsqrt.f32 %v1916_v27  ;;  %v1780_v32 = vmul.f32 0.0078125, %v1634_v7  ;;  %v5427_v38 = vld [vmem:[#allocation43_spill] sm:$0xff] }
 0x2cc   : > { %2380 = vst [vmem:[%s4648_s24 + $0x268] sm:$0xff] %v2288_v19  ;;  %v2148_v54 = vmul.f32 %v4593_v26, %v2052_v20  ;;  %3012 = vrsqrt.f32 %v1915_v52  ;;  %v1779_v36 = vmul.f32 0.0078125, %v1632_v17  ;;  %v5428_v17 = vld [vmem:[#allocation44_spill] sm:$0xff] }
 0x2cd   : > { %v3003_v58 = vpop.eup %3002  ;;  %2379 = vst [vmem:[%s4648_s24 + $0x260] sm:$0xff] %v2287_v8  ;;  %v2147_v37 = vmul.f32 %v4593_v26, %v2051_v15  ;;  %v1872_v62 = vadd.f32 1e-05, %v1780_v32 }
 0x2ce   : > { %v3005_v34 = vpop.eup %3004  ;;  %v2244_v63 = vadd.f32 %v4599_v33, %v2148_v54  ;;  %v2098_v21 = vmul.f32 %v3003_v58, %v5423_v43  ;;  %v1871_v60 = vadd.f32 1e-05, %v1779_v36  ;;  %v1726_v41 = vpop.xlane.xlu1 %1725 }
 0x2cf   : > { %v1724_v3 = vpop.xlane.xlu0 %1723  ;;  %v2243_v22 = vadd.f32 %v4599_v33, %v2147_v37  ;;  %v2097_v39 = vmul.f32 %v3005_v34, %v5424_v25  ;;  %3014 = vrsqrt.f32 %v1872_v62  ;;  %v1826_v57 = vmul.f32 0.0078125, %v1726_v41  ;;  %v5429_v34 = vld [vmem:[#allocation45_spill] sm:$0xff] }
 0x2d0   : > { %2336 = vst [vmem:[%s4648_s24 + $0x108] sm:$0xff] %v2244_v63  ;;  %v2194_v0 = vmul.f32 %v4593_v26, %v2098_v21  ;;  %3016 = vrsqrt.f32 %v1871_v60  ;;  %v1825_v44 = vmul.f32 0.0078125, %v1724_v3  ;;  %v5430_v3 = vld [vmem:[#allocation46_spill] sm:$0xff] }
 0x2d1   : > { %v3007_v18 = vpop.eup %3006  ;;  %2335 = vst [vmem:[%s4648_s24 + $0x100] sm:$0xff] %v2243_v22  ;;  %v2193_v4 = vmul.f32 %v4593_v26, %v2097_v39  ;;  %v1918_v1 = vadd.f32 1e-05, %v1826_v57 }
 0x2d2   : > { %v3009_v61 = vpop.eup %3008  ;;  %v2290_v2 = vadd.f32 %v4599_v33, %v2194_v0  ;;  %v2054_v30 = vmul.f32 %v3007_v18, %v5425_v56  ;;  %v1917_v49 = vadd.f32 1e-05, %v1825_v44  ;;  %v1638_v29 = vpop.xlane.xlu1 %1637 }
 0x2d3   : > { %v1636_v6 = vpop.xlane.xlu0 %1635  ;;  %v2289_v16 = vadd.f32 %v4599_v33, %v2193_v4  ;;  %v2053_v55 = vmul.f32 %v3009_v61, %v5426_v9  ;;  %3018 = vrsqrt.f32 %v1918_v1  ;;  %v1782_v47 = vmul.f32 0.0078125, %v1638_v29  ;;  %v5431_v61 = vld [vmem:[#allocation47_spill] sm:$0xff] }
 0x2d4   : > { %2382 = vst [vmem:[%s4648_s24 + $0x278] sm:$0xff] %v2290_v2  ;;  %v2150_v42 = vmul.f32 %v4593_v26, %v2054_v30  ;;  %3020 = vrsqrt.f32 %v1917_v49  ;;  %v1781_v28 = vmul.f32 0.0078125, %v1636_v6  ;;  %v5432_v6 = vld [vmem:[#allocation48_spill] sm:$0xff] }
 0x2d5   : > { %v3011_v59 = vpop.eup %3010  ;;  %2381 = vst [vmem:[%s4648_s24 + $0x270] sm:$0xff] %v2289_v16  ;;  %v2149_v45 = vmul.f32 %v4593_v26, %v2053_v55  ;;  %v1874_v50 = vadd.f32 1e-05, %v1782_v47 }
 0x2d6   : > { %v3013_v10 = vpop.eup %3012  ;;  %v2246_v27 = vadd.f32 %v4599_v33, %v2150_v42  ;;  %v2100_v19 = vmul.f32 %v3011_v59, %v5427_v38  ;;  %v1873_v40 = vadd.f32 1e-05, %v1781_v28  ;;  %v1730_v20 = vpop.xlane.xlu1 %1729 }
 0x2d7   : > { %v1728_v52 = vpop.xlane.xlu0 %1727  ;;  %v2245_v7 = vadd.f32 %v4599_v33, %v2149_v45  ;;  %v2099_v8 = vmul.f32 %v3013_v10, %v5428_v17  ;;  %3022 = vrsqrt.f32 %v1874_v50  ;;  %v1828_v35 = vmul.f32 0.0078125, %v1730_v20  ;;  %v5433_v20 = vld [vmem:[#allocation49_spill] sm:$0xff] }
 0x2d8   : > { %2338 = vst [vmem:[%s4648_s24 + $0x118] sm:$0xff] %v2246_v27  ;;  %v2196_v15 = vmul.f32 %v4593_v26, %v2100_v19  ;;  %3024 = vrsqrt.f32 %v1873_v40  ;;  %v1827_v32 = vmul.f32 0.0078125, %v1728_v52 }
 0x2d9   : > { %v3015_v54 = vpop.eup %3014  ;;  %2337 = vst [vmem:[%s4648_s24 + $0x110] sm:$0xff] %v2245_v7  ;;  %v2195_v36 = vmul.f32 %v4593_v26, %v2099_v8  ;;  %v1920_v58 = vadd.f32 1e-05, %v1828_v35 }
 0x2da   : > { %v3017_v37 = vpop.eup %3016  ;;  %v2292_v62 = vadd.f32 %v4599_v33, %v2196_v15  ;;  %v2056_v63 = vmul.f32 %v3015_v54, %v5429_v34  ;;  %v1919_v43 = vadd.f32 1e-05, %v1827_v32  ;;  %v1642_v21 = vpop.xlane.xlu1 %1641 }
 0x2db   : > { %v1640_v60 = vpop.xlane.xlu0 %1639  ;;  %v2291_v41 = vadd.f32 %v4599_v33, %v2195_v36  ;;  %v2055_v22 = vmul.f32 %v3017_v37, %v5430_v3  ;;  %3026 = vrsqrt.f32 %v1920_v58  ;;  %v1784_v25 = vmul.f32 0.0078125, %v1642_v21 }
 0x2dc   : > { %2384 = vst [vmem:[%s4648_s24 + $0x288] sm:$0xff] %v2292_v62  ;;  %v2152_v39 = vmul.f32 %v4593_v26, %v2056_v63  ;;  %3028 = vrsqrt.f32 %v1919_v43  ;;  %v1783_v57 = vmul.f32 0.0078125, %v1640_v60 }
 0x2dd   : > { %v3019_v0 = vpop.eup %3018  ;;  %2383 = vst [vmem:[%s4648_s24 + $0x280] sm:$0xff] %v2291_v41  ;;  %v2151_v44 = vmul.f32 %v4593_v26, %v2055_v22  ;;  %v1876_v18 = vadd.f32 1e-05, %v1784_v25 }
 0x2de   : > { %v3021_v4 = vpop.eup %3020  ;;  %v2248_v1 = vadd.f32 %v4599_v33, %v2152_v39  ;;  %v2102_v2 = vmul.f32 %v3019_v0, %v5431_v61  ;;  %v1875_v56 = vadd.f32 1e-05, %v1783_v57  ;;  %v1734_v30 = vpop.xlane.xlu1 %1733 }
 0x2df   : > { %v1732_v49 = vpop.xlane.xlu0 %1731  ;;  %v2247_v29 = vadd.f32 %v4599_v33, %v2151_v44  ;;  %v2101_v16 = vmul.f32 %v3021_v4, %v5432_v6  ;;  %3030 = vrsqrt.f32 %v1876_v18  ;;  %v1830_v9 = vmul.f32 0.0078125, %v1734_v30  ;;  %v5434_v18 = vld [vmem:[#allocation50_spill] sm:$0xff]  ;;  %v5435_v6 = vld [vmem:[#allocation5_spill] sm:$0xff] }
 0x2e0   : > { %2340 = vst [vmem:[%s4648_s24 + $0x128] sm:$0xff] %v2248_v1  ;;  %v2198_v55 = vmul.f32 %v4593_v26, %v2102_v2  ;;  %3032 = vrsqrt.f32 %v1875_v56  ;;  %v1829_v47 = vmul.f32 0.0078125, %v1732_v49 }
 0x2e1   : > { %v3023_v42 = vpop.eup %3022  ;;  %2339 = vst [vmem:[%s4648_s24 + $0x120] sm:$0xff] %v2247_v29  ;;  %v2197_v28 = vmul.f32 %v4593_v26, %v2101_v16  ;;  %v1922_v59 = vadd.f32 1e-05, %v1830_v9 }
 0x2e2   : > { %v3025_v45 = vpop.eup %3024  ;;  %v2294_v50 = vadd.f32 %v4599_v33, %v2198_v55  ;;  %v2058_v10 = vmul.f32 %v3023_v42, %v4558_v31  ;;  %v1921_v27 = vadd.f32 1e-05, %v1829_v47  ;;  %v1646_v38 = vpop.xlane.xlu1 %1645 }
 0x2e3   : > { %v1644_v19 = vpop.xlane.xlu0 %1643  ;;  %v2293_v40 = vadd.f32 %v4599_v33, %v2197_v28  ;;  %v2057_v52 = vmul.f32 %v3025_v45, %v5433_v20  ;;  %3034 = vrsqrt.f32 %v1922_v59  ;;  %v1786_v7 = vmul.f32 0.0078125, %v1646_v38  ;;  %v5436_v20 = vld [vmem:[#allocation51_spill] sm:$0xff] }
 0x2e4   : > { %2386 = vst [vmem:[%s4648_s24 + $0x298] sm:$0xff] %v2294_v50  ;;  %v2154_v17 = vmul.f32 %v4593_v26, %v2058_v10  ;;  %3036 = vrsqrt.f32 %v1921_v27  ;;  %v1785_v8 = vmul.f32 0.0078125, %v1644_v19 }
 0x2e5   : > { %v3027_v35 = vpop.eup %3026  ;;  %2385 = vst [vmem:[%s4648_s24 + $0x290] sm:$0xff] %v2293_v40  ;;  %v2153_v15 = vmul.f32 %v4593_v26, %v2057_v52  ;;  %v1878_v31 = vadd.f32 1e-05, %v1786_v7 }
 0x2e6   : > { %v3029_v32 = vpop.eup %3028  ;;  %v2250_v54 = vadd.f32 %v4599_v33, %v2154_v17  ;;  %v2104_v36 = vmul.f32 %v3027_v35, %v4572_v48  ;;  %v1877_v58 = vadd.f32 1e-05, %v1785_v8  ;;  %v1738_v37 = vpop.xlane.xlu1 %1737 }
 0x2e7   : > { %v1736_v62 = vpop.xlane.xlu0 %1735  ;;  %v2249_v34 = vadd.f32 %v4599_v33, %v2153_v15  ;;  %v2103_v63 = vmul.f32 %v3029_v32, %v4580_v13  ;;  %3038 = vrsqrt.f32 %v1878_v31  ;;  %v1832_v43 = vmul.f32 0.0078125, %v1738_v37 }
 0x2e8   : > { %2342 = vst [vmem:[%s4648_s24 + $0x138] sm:$0xff] %v2250_v54  ;;  %v2200_v21 = vmul.f32 %v4593_v26, %v2104_v36  ;;  %3040 = vrsqrt.f32 %v1877_v58  ;;  %v1831_v60 = vmul.f32 0.0078125, %v1736_v62 }
 0x2e9   : > { %v3031_v41 = vpop.eup %3030  ;;  %2341 = vst [vmem:[%s4648_s24 + $0x130] sm:$0xff] %v2249_v34  ;;  %v2199_v3 = vmul.f32 %v4593_v26, %v2103_v63  ;;  %v1924_v48 = vadd.f32 1e-05, %v1832_v43 }
 0x2ea   : > { %v3033_v22 = vpop.eup %3032  ;;  %v2296_v25 = vadd.f32 %v4599_v33, %v2200_v21  ;;  %v2060_v39 = vmul.f32 %v3031_v41, %v4583_v51  ;;  %v1923_v13 = vadd.f32 1e-05, %v1831_v60  ;;  %v1650_v57 = vpop.xlane.xlu1 %1649 }
 0x2eb   : > { %v1648_v0 = vpop.xlane.xlu0 %1647  ;;  %v2295_v44 = vadd.f32 %v4599_v33, %v2199_v3  ;;  %v2059_v4 = vmul.f32 %v3033_v22, %v5434_v18  ;;  %3042 = vrsqrt.f32 %v1924_v48  ;;  %v1788_v1 = vmul.f32 0.0078125, %v1650_v57 }
 0x2ec   : > { %2388 = vst [vmem:[%s4648_s24 + $0x2a8] sm:$0xff] %v2296_v25  ;;  %v2156_v61 = vmul.f32 %v4593_v26, %v2060_v39  ;;  %3044 = vrsqrt.f32 %v1923_v13  ;;  %v1787_v2 = vmul.f32 0.0078125, %v1648_v0 }
 0x2ed   : > { %v3035_v56 = vpop.eup %3034  ;;  %2387 = vst [vmem:[%s4648_s24 + $0x2a0] sm:$0xff] %v2295_v44  ;;  %v2155_v30 = vmul.f32 %v4593_v26, %v2059_v4  ;;  %v1880_v51 = vadd.f32 1e-05, %v1788_v1 }
 0x2ee   : > { %v3037_v49 = vpop.eup %3036  ;;  %v2252_v29 = vadd.f32 %v4599_v33, %v2156_v61  ;;  %v2106_v16 = vmul.f32 %v3035_v56, %v5435_v6  ;;  %v1879_v9 = vadd.f32 1e-05, %v1787_v2  ;;  %v1742_v55 = vpop.xlane.xlu1 %1741 }
 0x2ef   : > { %v1740_v47 = vpop.xlane.xlu0 %1739  ;;  %v2251_v42 = vadd.f32 %v4599_v33, %v2155_v30  ;;  %v2105_v28 = vmul.f32 %v3037_v49, %v4606_v23  ;;  %3046 = vrsqrt.f32 %v1880_v51  ;;  %v1834_v59 = vmul.f32 0.0078125, %v1742_v55 }
 0x2f0   : > { %2344 = vst [vmem:[%s4648_s24 + $0x148] sm:$0xff] %v2252_v29  ;;  %v2202_v45 = vmul.f32 %v4593_v26, %v2106_v16  ;;  %3048 = vrsqrt.f32 %v1879_v9  ;;  %v1833_v50 = vmul.f32 0.0078125, %v1740_v47 }
 0x2f1   : > { %v3039_v10 = vpop.eup %3038  ;;  %2343 = vst [vmem:[%s4648_s24 + $0x140] sm:$0xff] %v2251_v42  ;;  %v2201_v27 = vmul.f32 %v4593_v26, %v2105_v28  ;;  %v1926_v38 = vadd.f32 1e-05, %v1834_v59 }
 0x2f2   : > { %v3041_v19 = vpop.eup %3040  ;;  %v2298_v40 = vadd.f32 %v4599_v33, %v2202_v45  ;;  %v2062_v52 = vmul.f32 %v3039_v10, %v5436_v20  ;;  %v1925_v23 = vadd.f32 1e-05, %v1833_v50 }
 0x2f3   : > { %v2297_v7 = vadd.f32 %v4599_v33, %v2201_v27  ;;  %v2061_v17 = vmul.f32 %v3041_v19, %v4621_v53  ;;  %3050 = vrsqrt.f32 %v1926_v38 }
 0x2f4   : > { %2390 = vst [vmem:[%s4648_s24 + $0x2b8] sm:$0xff] %v2298_v40  ;;  %v2158_v8 = vmul.f32 %v4593_v26, %v2062_v52  ;;  %3052 = vrsqrt.f32 %v1925_v23 }
 0x2f5   : > { %v3043_v35 = vpop.eup %3042  ;;  %2389 = vst [vmem:[%s4648_s24 + $0x2b0] sm:$0xff] %v2297_v7  ;;  %v2157_v15 = vmul.f32 %v4593_v26, %v2061_v17 }
 0x2f6   : > { %v3045_v31 = vpop.eup %3044  ;;  %v2254_v32 = vadd.f32 %v4599_v33, %v2158_v8  ;;  %v2108_v54 = vmul.f32 %v3043_v35, %v4634_v12 }
 0x2f7   : > { %v2253_v36 = vadd.f32 %v4599_v33, %v2157_v15  ;;  %v2107_v53 = vmul.f32 %v3045_v31, %v4638_v24 }
 0x2f8   : > { %2346 = vst [vmem:[%s4648_s24 + $0x158] sm:$0xff] %v2254_v32  ;;  %v2204_v58 = vmul.f32 %v4593_v26, %v2108_v54 }
 0x2f9   : > { %v3047_v37 = vpop.eup %3046  ;;  %2345 = vst [vmem:[%s4648_s24 + $0x150] sm:$0xff] %v2253_v36  ;;  %v2203_v62 = vmul.f32 %v4593_v26, %v2107_v53 }
 0x2fa   : > { %v3049_v34 = vpop.eup %3048  ;;  %v2300_v63 = vadd.f32 %v4599_v33, %v2204_v58  ;;  %v2064_v43 = vmul.f32 %v3047_v37, %v4664_v5 }
 0x2fb   : > { %v2299_v12 = vadd.f32 %v4599_v33, %v2203_v62  ;;  %v2063_v21 = vmul.f32 %v3049_v34, %v4669_v11 }
 0x2fc   : > { %2392 = vst [vmem:[%s4648_s24 + $0x2c8] sm:$0xff] %v2300_v63  ;;  %v2160_v24 = vmul.f32 %v4593_v26, %v2064_v43 }
 0x2fd   : > { %v3051_v60 = vpop.eup %3050  ;;  %2391 = vst [vmem:[%s4648_s24 + $0x2c0] sm:$0xff] %v2299_v12  ;;  %v2159_v41 = vmul.f32 %v4593_v26, %v2063_v21 }
 0x2fe   : > { %v3053_v3 = vpop.eup %3052  ;;  %v2256_v48 = vadd.f32 %v4599_v33, %v2160_v24  ;;  %v2110_v22 = vmul.f32 %v3051_v60, %v4684_v46 }
 0x2ff   : > { %v2255_v5 = vadd.f32 %v4599_v33, %v2159_v41  ;;  %v2109_v25 = vmul.f32 %v3053_v3, %v4691_v14  ;;  %2402 = sbr.rel (!%p3180_p5) target bundleno = 802 (0x322), region = 36 }
 0x300   : > { %2348 = vst [vmem:[%s4648_s24 + $0x168] sm:$0xff] %v2256_v48  ;;  %v2206_v11 = vmul.f32 %v4593_v26, %v2110_v22 }
 0x301   : > { %2347 = vst [vmem:[%s4648_s24 + $0x160] sm:$0xff] %v2255_v5  ;;  %v2205_v39 = vmul.f32 %v4593_v26, %v2109_v25 }
 0x302   : > { %v2302_v13 = vadd.f32 %v4599_v33, %v2206_v11 }
 0x303   : > { %v2301_v57 = vadd.f32 %v4599_v33, %v2205_v39 }
 0x304   : > { %2394 = vst [vmem:[%s4648_s24 + $0x2d8] sm:$0xff] %v2302_v13 }
 0x305   : > { %2393 = vst [vmem:[%s4648_s24 + $0x2d0] sm:$0xff] %v2301_v57 }
 0x306   : > { %s5442_s26 = smov (!%p2405_p11, %s2404_s26), 92 }
 0x307   : > { %s5044_s27 = sshll.u32 %s5442_s26, 7 }
 0x308   : > { %s2409_s29 = ssub.s32 11776, %s5044_s27 }
 0x309   : > { %2410 = vsyncadd %s5039_s25, %s2409_s29  ;;  %p2575_p12 = scmp.ne.s32.totalorder %s5044_s27, 0  ;;  %s2581_s30 = smul.u32 11776, %s3163_s16 }
 0x30a   : > { %s2415_s4 = sshll.u32 %s4648_s24, 4  ;;  %s3119_s7 = smov [#allocation2]   ;;  %s5056_s4 = int_to_ptr.vmem [resolvable:$true] %s2415_s4 }
 0x30b   : > { %s5054_s6 = scalar_lea.hbm %s5103_s3, %s2581_s30  ;;  %s3055_s28 = scalar_lea.vmem %s5056_s4, %s5044_s27 }
 0x30c   : > { %p3056_p13 = scmp.ne.s32.totalorder %s5056_s4, %s3055_s28  ;;  %s3059_s8 = sshll.u32 %s3119_s7, 4  ;;  %s3060_s8 = int_to_ptr.vmem [resolvable:$false] %s3059_s8 }
 0x30d   : > { %s3061_s16 = scalar_lea.vmem %s3060_s8, 23552  ;;  %p3062_p2 = scmp.lt.s32.totalorder %s5056_s4, %s3060_s8 }
 0x30e   : > { %p3057_p0 = pnand %p3056_p13, %p2575_p12  ;;  %p3063_p3 = scmp.lt.s32.totalorder %s3061_s16, %s3055_s28 }
 0x310   : > { %p3058_p1 = pneg %p3057_p0  ;;  %p3064_p4 = por %p3063_p3, %p3062_p2 }
 0x312   : > { %p3065_p5 = pnand %p3064_p4, %p3058_p1 }
 0x314   : > { %3068 = shalt.err (!%p3065_p5)
}
 0x315   : > { %s3069_s9 = scalar_lea.hbm %s5054_s6, %s5044_s27  ;;  %s3073_s17 = scalar_lea.hbm %s5103_s3, 23424 }
 0x316   : > { %p3070_p7 = scmp.ne.s32.totalorder %s5054_s6, %s3069_s9  ;;  %p3074_p10 = scmp.lt.u32.totalorder %s5054_s6, %s5103_s3 }
 0x317   : > { %p3075_p11 = scmp.lt.u32.totalorder %s3073_s17, %s3069_s9  ;;  %p3077_p0 = scmp.lt.u32.totalorder %s3069_s9, %s5054_s6 }
 0x318   : > { %p3071_p8 = pnand %p3070_p7, %p2575_p12 }
 0x319   : > { %p3076_p13 = por %p3075_p11, %p3074_p10 }
 0x31a   : > { %p3072_p9 = pneg %p3071_p8 }
 0x31b   : > { %p3078_p1 = por %p3077_p0, %p3076_p13 }
 0x31d   : > { %p3079_p2 = pnand %p3078_p1, %p3072_p9 }
 0x31f   : > { %3082 = shalt.err (!%p3079_p2)
}
 0x320   : > { %s3120_s24 = smov 128   ;;  %s3121_s26 = smov 8  }
 0x321   : > { %2421 = dma.vmem_to_hbm [thread:$0]  (%p2575_p12), %s5056_s4, %s5044_s27, %s5054_s6, %s5039_s25, %s3120_s24, %s3120_s24, %s3121_s26  }
 0x322 PF: > { %p2835_p3 = scmp.ge.s32.totalorder %s3117_s15, 2  ;;  %s2430_s29 = sand.u32 1, %s3105_s12  }
 0x323   : > { %s2431_s30 = scalar_lea.sflag [#allocation3], %s2430_s29 }
 0x324   : > { %p2832_p4 = pnand %p2835_p3, %p3184_p6 }
 0x326   : > { %3100 = dma.done.wait (!%p2832_p4), %s2431_s30, 11776  }
 0x327   : > { %3102 = vsyncadd (!%p2832_p4), %s2431_s30, 4294955520  ;;  %p13_p5 = scmp.ge.s32.totalorder %s3167_s18, 4   ;;  %s5437_s12 = smov %s3109_s13 }
 0x328   : > { %s5438_s13 = smov %s3113_s14  ;;  %s5439_s14 = smov %s3178_s21 }
 0x329   : > { %s5440_s15 = smov %s3167_s18  ;;  %15 = sbr.rel (!%p13_p5) target bundleno = 3 (0x3), region = 67 }
 0x330   :  { %2436 = vsyncpa [#allocation3], 1 }
 0x331   :  { %2438 = vsyncpa [#allocation3 + $0x1], 1 }

</bundles_post_ra>
